<compile_context>
chip_gen: v7x
topology: tpu7x:2x2x1
jax: 0.10.0
libtpu: 0.0.40
codegen_flags: <defaults>
</compile_context>

<pallas_src>
import functools

import jax
import jax.numpy as jnp
from jax.experimental import pallas as pl
from jax.experimental.pallas import tpu as pltpu


def _round_up(x, m):
    return (x + m - 1) // m * m


def _pick_row_tile(m, tm_max):
    """Largest row tile <= tm_max that divides m and keeps sublane (8) alignment."""
    if m <= tm_max:
        return m
    for cand in range(tm_max, 7, -1):
        if m % cand == 0 and cand % 8 == 0:
            return cand
    # TODO(synk): ragged B*H*W with no aligned divisor -> pad rows + mask the BN stats
    # contribution instead of falling back to a single giant tile.
    return m


# ------------------------- Pallas kernels -------------------------

def matmul_relu_stats_kernel(x_ref, w_ref, b_ref, y_ref, sum_ref, sq_ref):
    """Fused: y = relu(x @ w + b) (bf16 out) + per-column BatchNorm batch statistics.

    Grid is (cores, row_blocks_per_core): the inner axis is 'arbitrary' and accumulates
    the sum / sum-of-squares into per-core resident (1, 8, N4) blocks; the outer axis is
    'parallel' (megacore-shardable) with distinct stat blocks per core."""
    acc = jnp.dot(x_ref[...], w_ref[...], preferred_element_type=jnp.float32)
    acc = acc + b_ref[...]                       # (tm, N4) + (1, N4) broadcast
    acc = jnp.maximum(acc, 0.0)                  # ReLU
    y_ref[...] = acc.astype(y_ref.dtype)         # bf16 intermediate (halves HBM traffic)

    @pl.when(pl.program_id(1) == 0)
    def _():
        sum_ref[...] = jnp.zeros_like(sum_ref)
        sq_ref[...] = jnp.zeros_like(sq_ref)

    # f32 stats from the f32 accumulator; (1, N4) broadcast over the 8 sublanes.
    sum_ref[...] += jnp.sum(acc, axis=0, keepdims=True)
    sq_ref[...] += jnp.sum(acc * acc, axis=0, keepdims=True)


def bn_apply_kernel(y_ref, scale_ref, shift_ref, o_ref):
    """Elementwise BatchNorm affine apply: o = y * scale + shift (per column), f32 out."""
    o_ref[...] = y_ref[...].astype(jnp.float32) * scale_ref[...] + shift_ref[...]


# ------------------------- Wrapper -------------------------

@functools.partial(jax.jit, static_argnames=("eps", "tm_max"))
def fcn_deconv_block(x, w, b, gamma, beta, *, eps=1e-5, tm_max=512):
    """x: (B, Cin, H, W) NCHW.  w: (Cin, Cout, 3, 3) (PyTorch ConvTranspose2d layout).
    Returns (B, Cout, 2H, 2W) NCHW."""
    B, Cin, H, W = x.shape
    Cout = w.shape[1]

    # Channel padding so K4 / N4 are multiples of 128 (lane-dense loads/stores).
    Cin_p = _round_up(Cin, 32)
    Cout_p = _round_up(Cout, 32)
    K4, N4 = 4 * Cin_p, 4 * Cout_p
    M = B * H * W
    tm = _pick_row_tile(M, tm_max)
    nblk = M // tm
    ncores = 2 if (nblk >= 2 and nblk % 2 == 0) else 1   # per-core stat partials (v7x)
    inner = nblk // ncores

    # ---- glue: shifted-input matrix X_cat (M, 4*Cin_p) in bf16 ----
    x_nhwc = jnp.transpose(x, (0, 2, 3, 1)).astype(jnp.bfloat16)        # (B,H,W,Cin)
    x_pad = jnp.pad(x_nhwc, ((0, 0), (0, 1), (0, 1), (0, Cin_p - Cin)))  # spatial+chan pad
    shifts = [x_pad[:, dy:dy + H, dx:dx + W, :] for dy in (0, 1) for dx in (0, 1)]
    x_cat = jnp.concatenate(shifts, axis=-1).reshape(M, K4)
    # TODO(synk): x_cat is a 4x duplicated copy of the input in HBM; shifted in_specs /
    # manual DMA from x_pad would remove this extra round-trip for production channel counts.

    # ---- glue: block weight matrix W_all (4*Cin_p, 4*Cout_p), cols ordered (cout, parity) ----
    # output pixel (2m+py, 2n+px) gets contributions from input (m+dy, n+dx) with kernel
    # tap determined by parity: p=0 -> (d=0, k=1); p=1 -> (d=0, k=2) or (d=1, k=0).
    def tap(p, d):
        if p == 0:
            return 1 if d == 0 else None
        return 2 if d == 0 else 0

    Wb = jnp.zeros((4, Cin_p, Cout_p, 4), jnp.float32)   # [shift d, cin, cout, parity]
    for py in (0, 1):
        for px in (0, 1):
            pidx = 2 * py + px
            for dy in (0, 1):
                for dx in (0, 1):
                    d = 2 * dy + dx
                    ky, kx = tap(py, dy), tap(px, dx)
                    if ky is None or kx is None:
                        continue
                    Wb = Wb.at[d, :Cin, :Cout, pidx].set(w[:, :, ky, kx])
    W_all = Wb.reshape(K4, N4).astype(jnp.bfloat16)

    b_pad = jnp.zeros((Cout_p,), jnp.float32).at[:Cout].set(b)
    b_all = jnp.repeat(b_pad, 4)[None, :]                # (1, N4), col = c*4 + parity

    # ---- Pallas kernel 1: matmul + bias + ReLU + BN stats ----
    y, ssum, ssq = pl.pallas_call(
        matmul_relu_stats_kernel,
        out_shape=(jax.ShapeDtypeStruct((M, N4), jnp.bfloat16),
                   jax.ShapeDtypeStruct((ncores, 8, N4), jnp.float32),
                   jax.ShapeDtypeStruct((ncores, 8, N4), jnp.float32)),
        grid=(ncores, inner),
        in_specs=[pl.BlockSpec((tm, K4), lambda c, i: (c * inner + i, 0)),
                  pl.BlockSpec((K4, N4), lambda c, i: (0, 0)),
                  pl.BlockSpec((1, N4), lambda c, i: (0, 0))],
        out_specs=(pl.BlockSpec((tm, N4), lambda c, i: (c * inner + i, 0)),
                   pl.BlockSpec((1, 8, N4), lambda c, i: (c, 0, 0)),
                   pl.BlockSpec((1, 8, N4), lambda c, i: (c, 0, 0))),
        compiler_params=pltpu.CompilerParams(
            dimension_semantics=("parallel", "arbitrary"),
            vmem_limit_bytes=48 * 1024 * 1024),
    )(x_cat, W_all, b_all)

    # ---- glue: finalize BN statistics (fold 4 parities per channel, f32) ----
    sum_col = ssum[:, 0, :].sum(axis=0)                  # (N4,)  sum over core partials
    sq_col = ssq[:, 0, :].sum(axis=0)
    sum_c = sum_col.reshape(Cout_p, 4).sum(axis=1)
    sq_c = sq_col.reshape(Cout_p, 4).sum(axis=1)
    count = jnp.float32(4 * M)                           # = B * (2H) * (2W)
    mean = sum_c / count
    var = sq_c / count - mean * mean                     # biased variance (training BN)
    gamma_p = jnp.zeros((Cout_p,), jnp.float32).at[:Cout].set(gamma)
    beta_p = jnp.zeros((Cout_p,), jnp.float32).at[:Cout].set(beta)
    inv = gamma_p * jax.lax.rsqrt(var + eps)
    scale = jnp.repeat(inv, 4)[None, :]                  # (1, N4)
    shift = jnp.repeat(beta_p - mean * inv, 4)[None, :]
    # TODO(synk): BatchNorm running_mean/running_var buffer updates (training side effect)
    # are not materialized; only the forward output is produced.

    # ---- Pallas kernel 2: BN affine apply ----
    y_bn = pl.pallas_call(
        bn_apply_kernel,
        out_shape=jax.ShapeDtypeStruct((M, N4), jnp.float32),
        grid=(nblk,),
        in_specs=[pl.BlockSpec((tm, N4), lambda i: (i, 0)),
                  pl.BlockSpec((1, N4), lambda i: (0, 0)),
                  pl.BlockSpec((1, N4), lambda i: (0, 0))],
        out_specs=pl.BlockSpec((tm, N4), lambda i: (i, 0)),
        compiler_params=pltpu.CompilerParams(
            dimension_semantics=("parallel",),
            vmem_limit_bytes=48 * 1024 * 1024),
    )(y, scale, shift)

    # ---- glue: parity interleave is metadata-only (cols are (cout,py,px) ordered);
    #            the single remaining layout pass is the unavoidable -> NCHW transpose.
    y6 = y_bn.reshape(B, H, W, Cout_p, 2, 2)[:, :, :, :Cout]      # (B,H,W,Cout,py,px)
    out = jnp.transpose(y6, (0, 3, 1, 4, 2, 5)).reshape(B, Cout, 2 * H, 2 * W)
    return out


# ------------------------- Pure-JAX reference -------------------------

def reference(x, w, b, gamma, beta, eps=1e-5):
    # ConvTranspose2d(k=3, s=2, p=1, op=1) == dilated conv with flipped kernel.
    w_flip = jnp.flip(w, axis=(2, 3))
    w_oihw = jnp.transpose(w_flip, (1, 0, 2, 3))     # (Cout, Cin, 3, 3)
    y = jax.lax.conv_general_dilated(
        x, w_oihw, window_strides=(1, 1), padding=((1, 2), (1, 2)),
        lhs_dilation=(2, 2), rhs_dilation=(1, 1),
        dimension_numbers=('NCHW', 'OIHW', 'NCHW'))
    y = y + b[None, :, None, None]
    y = jnp.maximum(y, 0.0)
    mean = y.mean(axis=(0, 2, 3), keepdims=True)
    var = ((y - mean) ** 2).mean(axis=(0, 2, 3), keepdims=True)
    y = (y - mean) / jnp.sqrt(var + eps)
    return y * gamma[None, :, None, None] + beta[None, :, None, None]


# ------------------------- Main -------------------------

if __name__ == "__main__":
    B, Cin, Cout, H, W = 2, 4, 8, 16, 16
    key = jax.random.PRNGKey(0)
    kx, kw, kb, kg, kbt = jax.random.split(key, 5)

    x = jax.random.normal(kx, (B, Cin, H, W), jnp.float32)
    w = jax.random.normal(kw, (Cin, Cout, 3, 3), jnp.float32) * 0.2   # ConvTranspose2d weight
    b = jax.random.normal(kb, (Cout,), jnp.float32) * 0.1             # ConvTranspose2d bias
    gamma = 1.0 + 0.1 * jax.random.normal(kg, (Cout,), jnp.float32)   # BatchNorm weight
    beta = 0.1 * jax.random.normal(kbt, (Cout,), jnp.float32)         # BatchNorm bias

    out = fcn_deconv_block(x, w, b, gamma, beta)
    out = jax.block_until_ready(out)

    ref = jax.block_until_ready(reference(x, w, b, gamma, beta))
    assert out.shape == (B, Cout, 2 * H, 2 * W), out.shape
    # Tolerance loosened vs the f32 reference because the matmul inputs and the
    # intermediate activation are bf16 (stats / BN math stay in f32).
    assert jnp.allclose(out, ref, rtol=5e-2, atol=5e-2), float(jnp.max(jnp.abs(out - ref)))

    print("KERNEL_OK")
</pallas_src>

<mosaic_0001>
module attributes {stable_mosaic.version = 11 : i64} {
  func.func @matmul_relu_stats_kernel(%arg0: i32, %arg1: i32, %arg2: memref<512x128xbf16, #tpu.memory_space<vmem>>, %arg3: memref<128x128xbf16, #tpu.memory_space<vmem>>, %arg4: memref<1x128xf32, #tpu.memory_space<vmem>>, %arg5: memref<512x128xbf16, #tpu.memory_space<vmem>>, %arg6: memref<1x8x128xf32, #tpu.memory_space<vmem>>, %arg7: memref<1x8x128xf32, #tpu.memory_space<vmem>>) attributes {dimension_semantics = [#tpu.dimension_semantics<parallel>, #tpu.dimension_semantics<arbitrary>], iteration_bounds = array<i64: 1, 1>, scalar_prefetch = 0 : i64, scratch_operands = 0 : i64, tpu.core_type = #tpu.core_type<tc>, window_params = [{transform_indices = @transform_0, window_bounds = array<i64: 512, 128>}, {pipeline_mode = #tpu.pipeline_mode<synchronous>, transform_indices = @transform_1, window_bounds = array<i64: 128, 128>}, {pipeline_mode = #tpu.pipeline_mode<synchronous>, transform_indices = @transform_2, window_bounds = array<i64: 1, 128>}, {transform_indices = @transform_3, window_bounds = array<i64: 512, 128>}, {transform_indices = @transform_4, window_bounds = array<i64: 1, 8, 128>}, {transform_indices = @transform_5, window_bounds = array<i64: 1, 8, 128>}]} {
    %c0 = arith.constant 0 : index
    %c0_0 = arith.constant 0 : index
    %0 = vector.load %arg2[%c0, %c0_0] : memref<512x128xbf16, #tpu.memory_space<vmem>>, vector<512x128xbf16>
    %c0_1 = arith.constant 0 : index
    %c0_2 = arith.constant 0 : index
    %1 = vector.load %arg3[%c0_1, %c0_2] : memref<128x128xbf16, #tpu.memory_space<vmem>>, vector<128x128xbf16>
    %cst = arith.constant dense<0.000000e+00> : vector<512x128xf32>
    %2 = tpu.matmul %0, %1, %cst {dimension_numbers = #tpu.dot_dimension_numbers<[1], [0], [0], [1], [0, 0, 1, 1], [], []>} : vector<512x128xbf16>, vector<128x128xbf16>, vector<512x128xf32> -> vector<512x128xf32>
    %c0_3 = arith.constant 0 : index
    %c0_4 = arith.constant 0 : index
    %3 = vector.load %arg4[%c0_3, %c0_4] : memref<1x128xf32, #tpu.memory_space<vmem>>, vector<1x128xf32>
    %4 = vector.broadcast %3 : vector<1x128xf32> to vector<512x128xf32>
    %5 = arith.addf %2, %4 : vector<512x128xf32>
    %cst_5 = arith.constant 0.000000e+00 : f32
    %6 = vector.broadcast %cst_5 : f32 to vector<512x128xf32>
    %7 = arith.maximumf %5, %6 : vector<512x128xf32>
    %8 = arith.truncf %7 : vector<512x128xf32> to vector<512x128xbf16>
    %c0_6 = arith.constant 0 : index
    %c0_7 = arith.constant 0 : index
    %9 = vector.load %arg5[%c0_6, %c0_7] : memref<512x128xbf16, #tpu.memory_space<vmem>>, vector<512x128xbf16>
    tpu.vector_store %arg5[%c0_6, %c0_7], %8 {strides = array<i32>} : memref<512x128xbf16, #tpu.memory_space<vmem>>, vector<512x128xbf16>,
    %c0_i32 = arith.constant 0 : i32
    %10 = arith.cmpi eq, %arg1, %c0_i32 : i32
    %11 = arith.extui %10 : i1 to i32
    %c0_i32_8 = arith.constant 0 : i32
    %12 = arith.cmpi ne, %11, %c0_i32_8 : i32
    scf.if %12 {
      %cst_23 = arith.constant 0.000000e+00 : f32
      %28 = vector.broadcast %cst_23 : f32 to vector<1x8x128xf32>
      %c0_24 = arith.constant 0 : index
      %c0_25 = arith.constant 0 : index
      %c0_26 = arith.constant 0 : index
      %29 = vector.load %arg6[%c0_24, %c0_25, %c0_26] : memref<1x8x128xf32, #tpu.memory_space<vmem>>, vector<1x8x128xf32>
      tpu.vector_store %arg6[%c0_24, %c0_25, %c0_26], %28 {strides = array<i32>} : memref<1x8x128xf32, #tpu.memory_space<vmem>>, vector<1x8x128xf32>,
      %cst_27 = arith.constant 0.000000e+00 : f32
      %30 = vector.broadcast %cst_27 : f32 to vector<1x8x128xf32>
      %c0_28 = arith.constant 0 : index
      %c0_29 = arith.constant 0 : index
      %c0_30 = arith.constant 0 : index
      %31 = vector.load %arg7[%c0_28, %c0_29, %c0_30] : memref<1x8x128xf32, #tpu.memory_space<vmem>>, vector<1x8x128xf32>
      tpu.vector_store %arg7[%c0_28, %c0_29, %c0_30], %30 {strides = array<i32>} : memref<1x8x128xf32, #tpu.memory_space<vmem>>, vector<1x8x128xf32>,
    } else {
    }
    %c0_9 = arith.constant 0 : index
    %c0_10 = arith.constant 0 : index
    %c0_11 = arith.constant 0 : index
    %13 = vector.load %arg6[%c0_9, %c0_10, %c0_11] : memref<1x8x128xf32, #tpu.memory_space<vmem>>, vector<1x8x128xf32>
    %cst_12 = arith.constant dense<0.000000e+00> : vector<128xf32>
    %14 = vector.multi_reduction <add>, %7, %cst_12 [0] : vector<512x128xf32> to vector<128xf32>
    %15 = vector.shape_cast %14 : vector<128xf32> to vector<1x128xf32>
    %16 = vector.shape_cast %15 : vector<1x128xf32> to vector<1x1x128xf32>
    %17 = vector.broadcast %16 : vector<1x1x128xf32> to vector<1x8x128xf32>
    %18 = arith.addf %13, %17 : vector<1x8x128xf32>
    %c0_13 = arith.constant 0 : index
    %c0_14 = arith.constant 0 : index
    %c0_15 = arith.constant 0 : index
    %19 = vector.load %arg6[%c0_13, %c0_14, %c0_15] : memref<1x8x128xf32, #tpu.memory_space<vmem>>, vector<1x8x128xf32>
    tpu.vector_store %arg6[%c0_13, %c0_14, %c0_15], %18 {strides = array<i32>} : memref<1x8x128xf32, #tpu.memory_space<vmem>>, vector<1x8x128xf32>,
    %c0_16 = arith.constant 0 : index
    %c0_17 = arith.constant 0 : index
    %c0_18 = arith.constant 0 : index
    %20 = vector.load %arg7[%c0_16, %c0_17, %c0_18] : memref<1x8x128xf32, #tpu.memory_space<vmem>>, vector<1x8x128xf32>
    %21 = arith.mulf %7, %7 : vector<512x128xf32>
    %cst_19 = arith.constant dense<0.000000e+00> : vector<128xf32>
    %22 = vector.multi_reduction <add>, %21, %cst_19 [0] : vector<512x128xf32> to vector<128xf32>
    %23 = vector.shape_cast %22 : vector<128xf32> to vector<1x128xf32>
    %24 = vector.shape_cast %23 : vector<1x128xf32> to vector<1x1x128xf32>
    %25 = vector.broadcast %24 : vector<1x1x128xf32> to vector<1x8x128xf32>
    %26 = arith.addf %20, %25 : vector<1x8x128xf32>
    %c0_20 = arith.constant 0 : index
    %c0_21 = arith.constant 0 : index
    %c0_22 = arith.constant 0 : index
    %27 = vector.load %arg7[%c0_20, %c0_21, %c0_22] : memref<1x8x128xf32, #tpu.memory_space<vmem>>, vector<1x8x128xf32>
    tpu.vector_store %arg7[%c0_20, %c0_21, %c0_22], %26 {strides = array<i32>} : memref<1x8x128xf32, #tpu.memory_space<vmem>>, vector<1x8x128xf32>,
    return
  }
  func.func @transform_0(%arg0: i32, %arg1: i32) -> (i32, i32) {
    %c1_i32 = arith.constant 1 : i32
    %0 = arith.muli %arg0, %c1_i32 : i32
    %1 = arith.addi %0, %arg1 : i32
    %c0_i32 = arith.constant 0 : i32
    %c0_i32_0 = arith.constant 0 : i32
    return %1, %c0_i32 : i32, i32
  }
  func.func @transform_1(%arg0: i32, %arg1: i32) -> (i32, i32) {
    %c0_i32 = arith.constant 0 : i32
    %c0_i32_0 = arith.constant 0 : i32
    %c0_i32_1 = arith.constant 0 : i32
    return %c0_i32, %c0_i32_0 : i32, i32
  }
  func.func @transform_2(%arg0: i32, %arg1: i32) -> (i32, i32) {
    %c0_i32 = arith.constant 0 : i32
    %c0_i32_0 = arith.constant 0 : i32
    %c0_i32_1 = arith.constant 0 : i32
    return %c0_i32, %c0_i32_0 : i32, i32
  }
  func.func @transform_3(%arg0: i32, %arg1: i32) -> (i32, i32) {
    %c1_i32 = arith.constant 1 : i32
    %0 = arith.muli %arg0, %c1_i32 : i32
    %1 = arith.addi %0, %arg1 : i32
    %c0_i32 = arith.constant 0 : i32
    %c0_i32_0 = arith.constant 0 : i32
    return %1, %c0_i32 : i32, i32
  }
  func.func @transform_4(%arg0: i32, %arg1: i32) -> (i32, i32, i32) {
    %c0_i32 = arith.constant 0 : i32
    %c0_i32_0 = arith.constant 0 : i32
    %c0_i32_1 = arith.constant 0 : i32
    return %arg0, %c0_i32, %c0_i32_0 : i32, i32, i32
  }
  func.func @transform_5(%arg0: i32, %arg1: i32) -> (i32, i32, i32) {
    %c0_i32 = arith.constant 0 : i32
    %c0_i32_0 = arith.constant 0 : i32
    %c0_i32_1 = arith.constant 0 : i32
    return %arg0, %c0_i32, %c0_i32_0 : i32, i32, i32
  }
}

module attributes {stable_mosaic.version = 11 : i64} {
  func.func @bn_apply_kernel(%arg0: i32, %arg1: memref<512x128xbf16, #tpu.memory_space<vmem>>, %arg2: memref<1x128xf32, #tpu.memory_space<vmem>>, %arg3: memref<1x128xf32, #tpu.memory_space<vmem>>, %arg4: memref<512x128xf32, #tpu.memory_space<vmem>>) attributes {dimension_semantics = [#tpu.dimension_semantics<parallel>], iteration_bounds = array<i64: 1>, scalar_prefetch = 0 : i64, scratch_operands = 0 : i64, tpu.core_type = #tpu.core_type<tc>, window_params = [{transform_indices = @transform_0, window_bounds = array<i64: 512, 128>}, {pipeline_mode = #tpu.pipeline_mode<synchronous>, transform_indices = @transform_1, window_bounds = array<i64: 1, 128>}, {pipeline_mode = #tpu.pipeline_mode<synchronous>, transform_indices = @transform_2, window_bounds = array<i64: 1, 128>}, {transform_indices = @transform_3, window_bounds = array<i64: 512, 128>}]} {
    %c0 = arith.constant 0 : index
    %c0_0 = arith.constant 0 : index
    %0 = vector.load %arg1[%c0, %c0_0] : memref<512x128xbf16, #tpu.memory_space<vmem>>, vector<512x128xbf16>
    %1 = arith.extf %0 : vector<512x128xbf16> to vector<512x128xf32>
    %c0_1 = arith.constant 0 : index
    %c0_2 = arith.constant 0 : index
    %2 = vector.load %arg2[%c0_1, %c0_2] : memref<1x128xf32, #tpu.memory_space<vmem>>, vector<1x128xf32>
    %3 = vector.broadcast %2 : vector<1x128xf32> to vector<512x128xf32>
    %4 = arith.mulf %1, %3 : vector<512x128xf32>
    %c0_3 = arith.constant 0 : index
    %c0_4 = arith.constant 0 : index
    %5 = vector.load %arg3[%c0_3, %c0_4] : memref<1x128xf32, #tpu.memory_space<vmem>>, vector<1x128xf32>
    %6 = vector.broadcast %5 : vector<1x128xf32> to vector<512x128xf32>
    %7 = arith.addf %4, %6 : vector<512x128xf32>
    %c0_5 = arith.constant 0 : index
    %c0_6 = arith.constant 0 : index
    %8 = vector.load %arg4[%c0_5, %c0_6] : memref<512x128xf32, #tpu.memory_space<vmem>>, vector<512x128xf32>
    tpu.vector_store %arg4[%c0_5, %c0_6], %7 {strides = array<i32>} : memref<512x128xf32, #tpu.memory_space<vmem>>, vector<512x128xf32>,
    return
  }
  func.func @transform_0(%arg0: i32) -> (i32, i32) {
    %c0_i32 = arith.constant 0 : i32
    %c0_i32_0 = arith.constant 0 : i32
    return %arg0, %c0_i32 : i32, i32
  }
  func.func @transform_1(%arg0: i32) -> (i32, i32) {
    %c0_i32 = arith.constant 0 : i32
    %c0_i32_0 = arith.constant 0 : i32
    %c0_i32_1 = arith.constant 0 : i32
    return %c0_i32, %c0_i32_0 : i32, i32
  }
  func.func @transform_2(%arg0: i32) -> (i32, i32) {
    %c0_i32 = arith.constant 0 : i32
    %c0_i32_0 = arith.constant 0 : i32
    %c0_i32_1 = arith.constant 0 : i32
    return %c0_i32, %c0_i32_0 : i32, i32
  }
  func.func @transform_3(%arg0: i32) -> (i32, i32) {
    %c0_i32 = arith.constant 0 : i32
    %c0_i32_0 = arith.constant 0 : i32
    return %arg0, %c0_i32 : i32, i32
  }
}

</mosaic_0001>

<bundles_post_ra>
// kernel: fcn_deconv_block.3
= control target key start
LH: loop header
LB: loop body
LE: loop exit
PB: predicated region body
PF: predicated region fallthrough
CT: control target
= control target key end

     0   :  { %s959_s0 = inlined_call_operand.vmem [shape: bf16[512,128], index: 0, kind: input, shape index: {}]   ;;  %s960_s1 = inlined_call_operand.vmem [shape: f32[1,128], index: 1, kind: input, shape index: {}]   ;;  %s961_s2 = inlined_call_operand.vmem [shape: f32[1,128], index: 2, kind: input, shape index: {}]   ;;  %s962_s3 = inlined_call_operand.vmem [shape: f32[512,128], index: 3, kind: output, shape index: {}]  }
   0x1   :  { %v355_v0 = vld [vmem:[%s959_s0] sm:$0xff]   ;;  %v482_v4 = vld [vmem:[%s959_s0 + $0x8] sm:$0xff]   ;;  %v483_v5 = vld [vmem:[%s959_s0 + $0x10] sm:$0xff]  }
   0x2   :  { %v539_v1 = vld [vmem:[%s960_s1] ss:$0 sm:$0xff]  ;;  %v356_v2 = vunpack.c.l.bf16 %v355_v0  ;;  %v357_v3 = vunpack.c.h.bf16 %v355_v0  ;;  %v484_v6 = vld [vmem:[%s959_s0 + $0x18] sm:$0xff]   ;;  %v360_v8 = vunpack.c.l.bf16 %v482_v4  ;;  %v361_v9 = vunpack.c.h.bf16 %v482_v4  ;;  %v486_v25 = vld [vmem:[%s959_s0 + $0x28] sm:$0xff]  }
   0x3   :  { %v553_v7 = vld [vmem:[%s961_s2] ss:$0 sm:$0xff]  ;;  %v364_v10 = vunpack.c.l.bf16 %v483_v5  ;;  %v365_v11 = vunpack.c.h.bf16 %v483_v5  ;;  %v368_v14 = vunpack.c.l.bf16 %v484_v6  ;;  %v369_v15 = vunpack.c.h.bf16 %v484_v6  ;;  %v487_v26 = vld [vmem:[%s959_s0 + $0x30] sm:$0xff]   ;;  %v488_v31 = vld [vmem:[%s959_s0 + $0x38] sm:$0xff]  }
   0x4   :  { %v149_v12 = vmul.f32 %v356_v2, %v539_v1  ;;  %v150_v13 = vmul.f32 %v357_v3, %v539_v1  ;;  %v151_v16 = vmul.f32 %v360_v8, %v539_v1  ;;  %v152_v17 = vmul.f32 %v361_v9, %v539_v1  ;;  %v485_v20 = vld [vmem:[%s959_s0 + $0x20] sm:$0xff]   ;;  %v490_v53 = vld [vmem:[%s959_s0 + $0x48] sm:$0xff]   ;;  %v491_v54 = vld [vmem:[%s959_s0 + $0x50] sm:$0xff]  }
   0x5   :  { %v153_v18 = vmul.f32 %v364_v10, %v539_v1  ;;  %v154_v19 = vmul.f32 %v365_v11, %v539_v1  ;;  %v155_v23 = vmul.f32 %v368_v14, %v539_v1  ;;  %v156_v24 = vmul.f32 %v369_v15, %v539_v1  ;;  %v489_v48 = vld [vmem:[%s959_s0 + $0x40] sm:$0xff]   ;;  %v492_v59 = vld [vmem:[%s959_s0 + $0x58] sm:$0xff]  }
   0x6   :  { %v220_v21 = vadd.f32 %v553_v7, %v149_v12  ;;  %v221_v22 = vadd.f32 %v553_v7, %v150_v13  ;;  %v222_v27 = vadd.f32 %v553_v7, %v151_v16  ;;  %v223_v28 = vadd.f32 %v553_v7, %v152_v17  ;;  %v493_v14 = vld [vmem:[%s959_s0 + $0x60] sm:$0xff]  }
   0x7   :  { %v224_v29 = vadd.f32 %v553_v7, %v153_v18  ;;  %v225_v30 = vadd.f32 %v553_v7, %v154_v19  ;;  %v226_v32 = vadd.f32 %v553_v7, %v155_v23  ;;  %v227_v33 = vadd.f32 %v553_v7, %v156_v24  ;;  %v494_v19 = vld [vmem:[%s959_s0 + $0x68] sm:$0xff]  }
   0x8   :  { %284 = vst [vmem:[%s962_s3] sm:$0xff] %v220_v21  ;;  %285 = vst [vmem:[%s962_s3 + $0x8] sm:$0xff] %v221_v22  ;;  %v372_v34 = vunpack.c.l.bf16 %v485_v20  ;;  %v373_v35 = vunpack.c.h.bf16 %v485_v20  ;;  %v376_v36 = vunpack.c.l.bf16 %v486_v25  ;;  %v377_v37 = vunpack.c.h.bf16 %v486_v25  ;;  %v495_v20 = vld [vmem:[%s959_s0 + $0x70] sm:$0xff]   ;;  %v496_v25 = vld [vmem:[%s959_s0 + $0x78] sm:$0xff]  }
   0x9   :  { %286 = vst [vmem:[%s962_s3 + $0x10] sm:$0xff] %v222_v27  ;;  %287 = vst [vmem:[%s962_s3 + $0x18] sm:$0xff] %v223_v28  ;;  %v380_v38 = vunpack.c.l.bf16 %v487_v26  ;;  %v381_v39 = vunpack.c.h.bf16 %v487_v26  ;;  %v384_v42 = vunpack.c.l.bf16 %v488_v31  ;;  %v385_v43 = vunpack.c.h.bf16 %v488_v31 }
   0xa   :  { %288 = vst [vmem:[%s962_s3 + $0x20] sm:$0xff] %v224_v29  ;;  %289 = vst [vmem:[%s962_s3 + $0x28] sm:$0xff] %v225_v30  ;;  %v157_v40 = vmul.f32 %v372_v34, %v539_v1  ;;  %v158_v41 = vmul.f32 %v373_v35, %v539_v1  ;;  %v159_v44 = vmul.f32 %v376_v36, %v539_v1  ;;  %v388_v62 = vunpack.c.l.bf16 %v489_v48 }
   0xb   :  { %290 = vst [vmem:[%s962_s3 + $0x30] sm:$0xff] %v226_v32  ;;  %291 = vst [vmem:[%s962_s3 + $0x38] sm:$0xff] %v227_v33  ;;  %v160_v45 = vmul.f32 %v377_v37, %v539_v1  ;;  %v161_v46 = vmul.f32 %v380_v38, %v539_v1  ;;  %v162_v47 = vmul.f32 %v381_v39, %v539_v1  ;;  %v389_v63 = vunpack.c.h.bf16 %v489_v48  ;;  %v499_v48 = vld [vmem:[%s959_s0 + $0x90] sm:$0xff]  }
   0xc   :  { %v228_v49 = vadd.f32 %v553_v7, %v157_v40  ;;  %v229_v50 = vadd.f32 %v553_v7, %v158_v41  ;;  %v163_v51 = vmul.f32 %v384_v42, %v539_v1  ;;  %v164_v52 = vmul.f32 %v385_v43, %v539_v1  ;;  %v497_v42 = vld [vmem:[%s959_s0 + $0x80] sm:$0xff]  }
   0xd   :  { %v230_v55 = vadd.f32 %v553_v7, %v159_v44  ;;  %v231_v56 = vadd.f32 %v553_v7, %v160_v45  ;;  %v232_v57 = vadd.f32 %v553_v7, %v161_v46  ;;  %v233_v58 = vadd.f32 %v553_v7, %v162_v47  ;;  %v498_v47 = vld [vmem:[%s959_s0 + $0x88] sm:$0xff]  }
   0xe   :  { %292 = vst [vmem:[%s962_s3 + $0x40] sm:$0xff] %v228_v49  ;;  %293 = vst [vmem:[%s962_s3 + $0x48] sm:$0xff] %v229_v50  ;;  %v234_v60 = vadd.f32 %v553_v7, %v163_v51  ;;  %v235_v61 = vadd.f32 %v553_v7, %v164_v52  ;;  %v392_v0 = vunpack.c.l.bf16 %v490_v53  ;;  %v393_v2 = vunpack.c.h.bf16 %v490_v53  ;;  %v500_v53 = vld [vmem:[%s959_s0 + $0x98] sm:$0xff]  }
   0xf   :  { %294 = vst [vmem:[%s962_s3 + $0x50] sm:$0xff] %v230_v55  ;;  %295 = vst [vmem:[%s962_s3 + $0x58] sm:$0xff] %v231_v56  ;;  %v396_v3 = vunpack.c.l.bf16 %v491_v54  ;;  %v397_v4 = vunpack.c.h.bf16 %v491_v54  ;;  %v165_v5 = vmul.f32 %v388_v62, %v539_v1  ;;  %v166_v6 = vmul.f32 %v389_v63, %v539_v1 }
  0x10   :  { %296 = vst [vmem:[%s962_s3 + $0x60] sm:$0xff] %v232_v57  ;;  %297 = vst [vmem:[%s962_s3 + $0x68] sm:$0xff] %v233_v58  ;;  %v400_v8 = vunpack.c.l.bf16 %v492_v59  ;;  %v401_v9 = vunpack.c.h.bf16 %v492_v59  ;;  %v167_v10 = vmul.f32 %v392_v0, %v539_v1  ;;  %v168_v11 = vmul.f32 %v393_v2, %v539_v1 }
  0x11   :  { %298 = vst [vmem:[%s962_s3 + $0x70] sm:$0xff] %v234_v60  ;;  %299 = vst [vmem:[%s962_s3 + $0x78] sm:$0xff] %v235_v61  ;;  %v169_v12 = vmul.f32 %v396_v3, %v539_v1  ;;  %v170_v13 = vmul.f32 %v397_v4, %v539_v1  ;;  %v236_v15 = vadd.f32 %v553_v7, %v165_v5  ;;  %v404_v28 = vunpack.c.l.bf16 %v493_v14 }
  0x12   :  { %v237_v16 = vadd.f32 %v553_v7, %v166_v6  ;;  %v171_v17 = vmul.f32 %v400_v8, %v539_v1  ;;  %v172_v18 = vmul.f32 %v401_v9, %v539_v1  ;;  %v238_v21 = vadd.f32 %v553_v7, %v167_v10  ;;  %v501_v8 = vld [vmem:[%s959_s0 + $0xa0] sm:$0xff]  }
  0x13   :  { %v239_v22 = vadd.f32 %v553_v7, %v168_v11  ;;  %v240_v23 = vadd.f32 %v553_v7, %v169_v12  ;;  %v241_v24 = vadd.f32 %v553_v7, %v170_v13  ;;  %300 = vst [vmem:[%s962_s3 + $0x80] sm:$0xff] %v236_v15  ;;  %v405_v29 = vunpack.c.h.bf16 %v493_v14  ;;  %v502_v13 = vld [vmem:[%s959_s0 + $0xa8] sm:$0xff]   ;;  %v503_v14 = vld [vmem:[%s959_s0 + $0xb0] sm:$0xff]  }
  0x14   :  { %301 = vst [vmem:[%s962_s3 + $0x88] sm:$0xff] %v237_v16  ;;  %v242_v26 = vadd.f32 %v553_v7, %v171_v17  ;;  %v243_v27 = vadd.f32 %v553_v7, %v172_v18  ;;  %302 = vst [vmem:[%s962_s3 + $0x90] sm:$0xff] %v238_v21  ;;  %v408_v30 = vunpack.c.l.bf16 %v494_v19  ;;  %v409_v31 = vunpack.c.h.bf16 %v494_v19  ;;  %v504_v19 = vld [vmem:[%s959_s0 + $0xb8] sm:$0xff]  }
  0x15   :  { %303 = vst [vmem:[%s962_s3 + $0x98] sm:$0xff] %v239_v22  ;;  %304 = vst [vmem:[%s962_s3 + $0xa0] sm:$0xff] %v240_v23  ;;  %v412_v32 = vunpack.c.l.bf16 %v495_v20  ;;  %v413_v33 = vunpack.c.h.bf16 %v495_v20  ;;  %v173_v34 = vmul.f32 %v404_v28, %v539_v1  ;;  %v174_v35 = vmul.f32 %v405_v29, %v539_v1 }
  0x16   :  { %305 = vst [vmem:[%s962_s3 + $0xa8] sm:$0xff] %v241_v24  ;;  %306 = vst [vmem:[%s962_s3 + $0xb0] sm:$0xff] %v242_v26  ;;  %v416_v36 = vunpack.c.l.bf16 %v496_v25  ;;  %v417_v37 = vunpack.c.h.bf16 %v496_v25  ;;  %v175_v38 = vmul.f32 %v408_v30, %v539_v1  ;;  %v176_v39 = vmul.f32 %v409_v31, %v539_v1 }
  0x17   :  { %307 = vst [vmem:[%s962_s3 + $0xb8] sm:$0xff] %v243_v27  ;;  %v177_v40 = vmul.f32 %v412_v32, %v539_v1  ;;  %v178_v41 = vmul.f32 %v413_v33, %v539_v1  ;;  %v244_v43 = vadd.f32 %v553_v7, %v173_v34  ;;  %v245_v44 = vadd.f32 %v553_v7, %v174_v35 }
  0x18   :  { %v179_v45 = vmul.f32 %v416_v36, %v539_v1  ;;  %v180_v46 = vmul.f32 %v417_v37, %v539_v1  ;;  %v246_v49 = vadd.f32 %v553_v7, %v175_v38  ;;  %v247_v50 = vadd.f32 %v553_v7, %v176_v39  ;;  %v505_v36 = vld [vmem:[%s959_s0 + $0xc0] sm:$0xff]  }
  0x19   :  { %v248_v51 = vadd.f32 %v553_v7, %v177_v40  ;;  %v249_v52 = vadd.f32 %v553_v7, %v178_v41  ;;  %308 = vst [vmem:[%s962_s3 + $0xc0] sm:$0xff] %v244_v43  ;;  %309 = vst [vmem:[%s962_s3 + $0xc8] sm:$0xff] %v245_v44  ;;  %v420_v56 = vunpack.c.l.bf16 %v497_v42  ;;  %v421_v57 = vunpack.c.h.bf16 %v497_v42  ;;  %v506_v41 = vld [vmem:[%s959_s0 + $0xc8] sm:$0xff]   ;;  %v507_v42 = vld [vmem:[%s959_s0 + $0xd0] sm:$0xff]  }
  0x1a   :  { %v250_v54 = vadd.f32 %v553_v7, %v179_v45  ;;  %v251_v55 = vadd.f32 %v553_v7, %v180_v46  ;;  %310 = vst [vmem:[%s962_s3 + $0xd0] sm:$0xff] %v246_v49  ;;  %311 = vst [vmem:[%s962_s3 + $0xd8] sm:$0xff] %v247_v50  ;;  %v424_v58 = vunpack.c.l.bf16 %v498_v47  ;;  %v425_v59 = vunpack.c.h.bf16 %v498_v47  ;;  %v508_v47 = vld [vmem:[%s959_s0 + $0xd8] sm:$0xff]  }
  0x1b   :  { %312 = vst [vmem:[%s962_s3 + $0xe0] sm:$0xff] %v248_v51  ;;  %313 = vst [vmem:[%s962_s3 + $0xe8] sm:$0xff] %v249_v52  ;;  %v428_v60 = vunpack.c.l.bf16 %v499_v48  ;;  %v429_v61 = vunpack.c.h.bf16 %v499_v48  ;;  %v181_v62 = vmul.f32 %v420_v56, %v539_v1  ;;  %v182_v63 = vmul.f32 %v421_v57, %v539_v1 }
  0x1c   :  { %314 = vst [vmem:[%s962_s3 + $0xf0] sm:$0xff] %v250_v54  ;;  %315 = vst [vmem:[%s962_s3 + $0xf8] sm:$0xff] %v251_v55  ;;  %v432_v0 = vunpack.c.l.bf16 %v500_v53  ;;  %v433_v2 = vunpack.c.h.bf16 %v500_v53  ;;  %v183_v3 = vmul.f32 %v424_v58, %v539_v1  ;;  %v184_v4 = vmul.f32 %v425_v59, %v539_v1 }
  0x1d   :  { %v185_v5 = vmul.f32 %v428_v60, %v539_v1  ;;  %v186_v6 = vmul.f32 %v429_v61, %v539_v1  ;;  %v252_v9 = vadd.f32 %v553_v7, %v181_v62  ;;  %v253_v10 = vadd.f32 %v553_v7, %v182_v63 }
  0x1e   :  { %v187_v11 = vmul.f32 %v432_v0, %v539_v1  ;;  %v188_v12 = vmul.f32 %v433_v2, %v539_v1  ;;  %v254_v15 = vadd.f32 %v553_v7, %v183_v3  ;;  %v255_v16 = vadd.f32 %v553_v7, %v184_v4  ;;  %v509_v0 = vld [vmem:[%s959_s0 + $0xe0] sm:$0xff]  }
  0x1f   :  { %v256_v17 = vadd.f32 %v553_v7, %v185_v5  ;;  %v257_v18 = vadd.f32 %v553_v7, %v186_v6  ;;  %316 = vst [vmem:[%s962_s3 + $0x100] sm:$0xff] %v252_v9  ;;  %317 = vst [vmem:[%s962_s3 + $0x108] sm:$0xff] %v253_v10  ;;  %v436_v22 = vunpack.c.l.bf16 %v501_v8  ;;  %v437_v23 = vunpack.c.h.bf16 %v501_v8  ;;  %v510_v6 = vld [vmem:[%s959_s0 + $0xe8] sm:$0xff]   ;;  %v511_v8 = vld [vmem:[%s959_s0 + $0xf0] sm:$0xff]  }
  0x20   :  { %v258_v20 = vadd.f32 %v553_v7, %v187_v11  ;;  %v259_v21 = vadd.f32 %v553_v7, %v188_v12  ;;  %318 = vst [vmem:[%s962_s3 + $0x110] sm:$0xff] %v254_v15  ;;  %319 = vst [vmem:[%s962_s3 + $0x118] sm:$0xff] %v255_v16  ;;  %v440_v24 = vunpack.c.l.bf16 %v502_v13  ;;  %v441_v25 = vunpack.c.h.bf16 %v502_v13  ;;  %v512_v13 = vld [vmem:[%s959_s0 + $0xf8] sm:$0xff]  }
  0x21   :  { %320 = vst [vmem:[%s962_s3 + $0x120] sm:$0xff] %v256_v17  ;;  %321 = vst [vmem:[%s962_s3 + $0x128] sm:$0xff] %v257_v18  ;;  %v444_v26 = vunpack.c.l.bf16 %v503_v14  ;;  %v445_v27 = vunpack.c.h.bf16 %v503_v14  ;;  %v189_v28 = vmul.f32 %v436_v22, %v539_v1  ;;  %v190_v29 = vmul.f32 %v437_v23, %v539_v1 }
  0x22   :  { %322 = vst [vmem:[%s962_s3 + $0x130] sm:$0xff] %v258_v20  ;;  %323 = vst [vmem:[%s962_s3 + $0x138] sm:$0xff] %v259_v21  ;;  %v448_v30 = vunpack.c.l.bf16 %v504_v19  ;;  %v449_v31 = vunpack.c.h.bf16 %v504_v19  ;;  %v191_v32 = vmul.f32 %v440_v24, %v539_v1  ;;  %v192_v33 = vmul.f32 %v441_v25, %v539_v1 }
  0x23   :  { %v193_v34 = vmul.f32 %v444_v26, %v539_v1  ;;  %v194_v35 = vmul.f32 %v445_v27, %v539_v1  ;;  %v260_v37 = vadd.f32 %v553_v7, %v189_v28  ;;  %v261_v38 = vadd.f32 %v553_v7, %v190_v29 }
  0x24   :  { %v195_v39 = vmul.f32 %v448_v30, %v539_v1  ;;  %v196_v40 = vmul.f32 %v449_v31, %v539_v1  ;;  %v262_v43 = vadd.f32 %v553_v7, %v191_v32  ;;  %v263_v44 = vadd.f32 %v553_v7, %v192_v33 }
  0x25   :  { %v264_v45 = vadd.f32 %v553_v7, %v193_v34  ;;  %v265_v46 = vadd.f32 %v553_v7, %v194_v35  ;;  %324 = vst [vmem:[%s962_s3 + $0x140] sm:$0xff] %v260_v37  ;;  %325 = vst [vmem:[%s962_s3 + $0x148] sm:$0xff] %v261_v38  ;;  %v452_v50 = vunpack.c.l.bf16 %v505_v36  ;;  %v453_v51 = vunpack.c.h.bf16 %v505_v36 }
  0x26   :  { %v266_v48 = vadd.f32 %v553_v7, %v195_v39  ;;  %v267_v49 = vadd.f32 %v553_v7, %v196_v40  ;;  %326 = vst [vmem:[%s962_s3 + $0x150] sm:$0xff] %v262_v43  ;;  %327 = vst [vmem:[%s962_s3 + $0x158] sm:$0xff] %v263_v44  ;;  %v456_v52 = vunpack.c.l.bf16 %v506_v41  ;;  %v457_v53 = vunpack.c.h.bf16 %v506_v41 }
  0x27   :  { %328 = vst [vmem:[%s962_s3 + $0x160] sm:$0xff] %v264_v45  ;;  %329 = vst [vmem:[%s962_s3 + $0x168] sm:$0xff] %v265_v46  ;;  %v460_v54 = vunpack.c.l.bf16 %v507_v42  ;;  %v461_v55 = vunpack.c.h.bf16 %v507_v42  ;;  %v197_v56 = vmul.f32 %v452_v50, %v539_v1  ;;  %v198_v57 = vmul.f32 %v453_v51, %v539_v1 }
  0x28   :  { %330 = vst [vmem:[%s962_s3 + $0x170] sm:$0xff] %v266_v48  ;;  %331 = vst [vmem:[%s962_s3 + $0x178] sm:$0xff] %v267_v49  ;;  %v464_v58 = vunpack.c.l.bf16 %v508_v47  ;;  %v465_v59 = vunpack.c.h.bf16 %v508_v47  ;;  %v199_v60 = vmul.f32 %v456_v52, %v539_v1  ;;  %v200_v61 = vmul.f32 %v457_v53, %v539_v1 }
  0x29   :  { %v201_v62 = vmul.f32 %v460_v54, %v539_v1  ;;  %v202_v63 = vmul.f32 %v461_v55, %v539_v1  ;;  %v268_v2 = vadd.f32 %v553_v7, %v197_v56  ;;  %v269_v3 = vadd.f32 %v553_v7, %v198_v57 }
  0x2a   :  { %v203_v4 = vmul.f32 %v464_v58, %v539_v1  ;;  %v204_v5 = vmul.f32 %v465_v59, %v539_v1  ;;  %v270_v9 = vadd.f32 %v553_v7, %v199_v60  ;;  %v271_v10 = vadd.f32 %v553_v7, %v200_v61 }
  0x2b   :  { %v272_v11 = vadd.f32 %v553_v7, %v201_v62  ;;  %v273_v12 = vadd.f32 %v553_v7, %v202_v63  ;;  %332 = vst [vmem:[%s962_s3 + $0x180] sm:$0xff] %v268_v2  ;;  %333 = vst [vmem:[%s962_s3 + $0x188] sm:$0xff] %v269_v3  ;;  %v468_v16 = vunpack.c.l.bf16 %v509_v0  ;;  %v469_v17 = vunpack.c.h.bf16 %v509_v0 }
  0x2c   :  { %v274_v14 = vadd.f32 %v553_v7, %v203_v4  ;;  %v275_v15 = vadd.f32 %v553_v7, %v204_v5  ;;  %334 = vst [vmem:[%s962_s3 + $0x190] sm:$0xff] %v270_v9  ;;  %335 = vst [vmem:[%s962_s3 + $0x198] sm:$0xff] %v271_v10  ;;  %v472_v18 = vunpack.c.l.bf16 %v510_v6  ;;  %v473_v19 = vunpack.c.h.bf16 %v510_v6 }
  0x2d   :  { %336 = vst [vmem:[%s962_s3 + $0x1a0] sm:$0xff] %v272_v11  ;;  %337 = vst [vmem:[%s962_s3 + $0x1a8] sm:$0xff] %v273_v12  ;;  %v476_v20 = vunpack.c.l.bf16 %v511_v8  ;;  %v477_v21 = vunpack.c.h.bf16 %v511_v8  ;;  %v205_v22 = vmul.f32 %v468_v16, %v539_v1  ;;  %v206_v23 = vmul.f32 %v469_v17, %v539_v1 }
  0x2e   :  { %338 = vst [vmem:[%s962_s3 + $0x1b0] sm:$0xff] %v274_v14  ;;  %339 = vst [vmem:[%s962_s3 + $0x1b8] sm:$0xff] %v275_v15  ;;  %v480_v24 = vunpack.c.l.bf16 %v512_v13  ;;  %v481_v25 = vunpack.c.h.bf16 %v512_v13  ;;  %v207_v26 = vmul.f32 %v472_v18, %v539_v1  ;;  %v208_v27 = vmul.f32 %v473_v19, %v539_v1 }
  0x2f   :  { %v209_v28 = vmul.f32 %v476_v20, %v539_v1  ;;  %v210_v29 = vmul.f32 %v477_v21, %v539_v1  ;;  %v276_v30 = vadd.f32 %v553_v7, %v205_v22  ;;  %v277_v31 = vadd.f32 %v553_v7, %v206_v23 }
  0x30   :  { %v211_v32 = vmul.f32 %v480_v24, %v539_v1  ;;  %v212_v33 = vmul.f32 %v481_v25, %v539_v1  ;;  %v278_v34 = vadd.f32 %v553_v7, %v207_v26  ;;  %v279_v35 = vadd.f32 %v553_v7, %v208_v27 }
  0x31   :  { %v280_v36 = vadd.f32 %v553_v7, %v209_v28  ;;  %v281_v37 = vadd.f32 %v553_v7, %v210_v29  ;;  %340 = vst [vmem:[%s962_s3 + $0x1c0] sm:$0xff] %v276_v30  ;;  %341 = vst [vmem:[%s962_s3 + $0x1c8] sm:$0xff] %v277_v31 }
  0x32   :  { %v282_v38 = vadd.f32 %v553_v7, %v211_v32  ;;  %v283_v1 = vadd.f32 %v553_v7, %v212_v33  ;;  %342 = vst [vmem:[%s962_s3 + $0x1d0] sm:$0xff] %v278_v34  ;;  %343 = vst [vmem:[%s962_s3 + $0x1d8] sm:$0xff] %v279_v35 }
  0x33   :  { %344 = vst [vmem:[%s962_s3 + $0x1e0] sm:$0xff] %v280_v36  ;;  %345 = vst [vmem:[%s962_s3 + $0x1e8] sm:$0xff] %v281_v37 }
  0x34   :  { %346 = vst [vmem:[%s962_s3 + $0x1f0] sm:$0xff] %v282_v38  ;;  %347 = vst [vmem:[%s962_s3 + $0x1f8] sm:$0xff] %v283_v1 }

// kernel: fcn_deconv_block.2
= control target key start
LH: loop header
LB: loop body
LE: loop exit
PB: predicated region body
PF: predicated region fallthrough
CT: control target
= control target key end

     0   :  { %s2391_s1 = inlined_call_operand.vmem [shape: bf16[128,128], index: 1, kind: input, shape index: {}]   ;;  %s2392_s0 = inlined_call_operand.vmem [shape: bf16[512,128], index: 0, kind: input, shape index: {}]   ;;  %s2393_s2 = inlined_call_operand.vmem [shape: f32[1,128], index: 2, kind: input, shape index: {}]   ;;  %s2394_s3 = inlined_call_operand.vmem [shape: bf16[512,128], index: 3, kind: output, shape index: {0}]   ;;  %s2395_s4 = inlined_call_operand.vmem [shape: f32[1,8,128], index: 4, kind: output, shape index: {1}]   ;;  %s2396_s5 = inlined_call_operand.vmem [shape: f32[1,8,128], index: 5, kind: output, shape index: {2}]  }
   0x1   :  { %v1805_v0 = vld [vmem:[%s2391_s1] sm:$0xff]   ;;  %v1806_v1 = vld [vmem:[%s2391_s1 + $0x8] sm:$0xff]   ;;  %v1807_v2 = vld [vmem:[%s2391_s1 + $0x10] sm:$0xff]  }
   0x2   :  { %1708 = vmatprep.subr.bf16.mxu0 %v1805_v0  ;;  %1788 = vmatprep.subr.bf16.mxu1 %v1805_v0  ;;  %v1808_v3 = vld [vmem:[%s2391_s1 + $0x18] sm:$0xff]   ;;  %v1813_v4 = vld [vmem:[%s2392_s0] sm:$0xff]   ;;  %v1810_v6 = vld [vmem:[%s2391_s1 + $0x28] sm:$0xff]  }
   0x3   :  { %1709 = vmatpush3.bf16.msra.mxu0 %v1805_v0  ;;  %1796 = vmatpush3.bf16.msra.mxu1 %v1805_v0  ;;  %v1809_v5 = vld [vmem:[%s2391_s1 + $0x20] sm:$0xff]   ;;  %v1811_v7 = vld [vmem:[%s2391_s1 + $0x30] sm:$0xff]   ;;  %v1812_v8 = vld [vmem:[%s2391_s1 + $0x38] sm:$0xff]  }
   0x4   :  { %1710 = vmatprep.subr.bf16.mxu0 %v1806_v1  ;;  %1789 = vmatprep.subr.bf16.mxu1 %v1806_v1  ;;  %v1829_v9 = vld [vmem:[%s2392_s0 + $0x80] sm:$0xff]   ;;  %v1814_v10 = vld [vmem:[%s2392_s0 + $0x8] sm:$0xff]   ;;  %v1815_v11 = vld [vmem:[%s2392_s0 + $0x10] sm:$0xff]  }
   0x5   :  { %1724 = vmatprep.mubr.bf16.mxu0 %v1813_v4  ;;  %1756 = vmatprep.mubr.bf16.mxu1 %v1829_v9  ;;  %v1830_v12 = vld [vmem:[%s2392_s0 + $0x88] sm:$0xff]   ;;  %v1831_v13 = vld [vmem:[%s2392_s0 + $0x90] sm:$0xff]   ;;  %v1816_v14 = vld [vmem:[%s2392_s0 + $0x18] sm:$0xff]  }
   0x6   :  { %v1817_v15 = vld [vmem:[%s2392_s0 + $0x20] sm:$0xff]   ;;  %v1832_v16 = vld [vmem:[%s2392_s0 + $0x98] sm:$0xff]   ;;  %v1818_v18 = vld [vmem:[%s2392_s0 + $0x28] sm:$0xff]  }
   0x7   :  { %1711 = vmatpush3.bf16.msra.mxu0 %v1806_v1  ;;  %1797 = vmatpush3.bf16.msra.mxu1 %v1806_v1  ;;  %v1833_v17 = vld [vmem:[%s2392_s0 + $0xa0] sm:$0xff]   ;;  %v1834_v19 = vld [vmem:[%s2392_s0 + $0xa8] sm:$0xff]   ;;  %v1819_v20 = vld [vmem:[%s2392_s0 + $0x30] sm:$0xff]  }
   0x8   :  { %1712 = vmatprep.subr.bf16.mxu0 %v1807_v2  ;;  %1790 = vmatprep.subr.bf16.mxu1 %v1807_v2  ;;  %v1835_v21 = vld [vmem:[%s2392_s0 + $0xb0] sm:$0xff]   ;;  %v1820_v22 = vld [vmem:[%s2392_s0 + $0x38] sm:$0xff]   ;;  %v1821_v24 = vld [vmem:[%s2392_s0 + $0x40] sm:$0xff]  }
   0x9   :  { %v1836_v23 = vld [vmem:[%s2392_s0 + $0xb8] sm:$0xff]   ;;  %v1837_v25 = vld [vmem:[%s2392_s0 + $0xc0] sm:$0xff]   ;;  %v1822_v26 = vld [vmem:[%s2392_s0 + $0x48] sm:$0xff]  }
   0xa   :  { %v1838_v27 = vld [vmem:[%s2392_s0 + $0xc8] sm:$0xff]   ;;  %v1823_v28 = vld [vmem:[%s2392_s0 + $0x50] sm:$0xff]   ;;  %v1824_v30 = vld [vmem:[%s2392_s0 + $0x58] sm:$0xff]  }
   0xb   :  { %1713 = vmatpush3.bf16.msra.mxu0 %v1807_v2  ;;  %1798 = vmatpush3.bf16.msra.mxu1 %v1807_v2  ;;  %v1839_v29 = vld [vmem:[%s2392_s0 + $0xd0] sm:$0xff]   ;;  %v1840_v31 = vld [vmem:[%s2392_s0 + $0xd8] sm:$0xff]   ;;  %v1825_v32 = vld [vmem:[%s2392_s0 + $0x60] sm:$0xff]  }
   0xc   :  { %1714 = vmatprep.subr.bf16.mxu0 %v1808_v3  ;;  %1791 = vmatprep.subr.bf16.mxu1 %v1808_v3  ;;  %v1841_v33 = vld [vmem:[%s2392_s0 + $0xe0] sm:$0xff]   ;;  %v1826_v34 = vld [vmem:[%s2392_s0 + $0x68] sm:$0xff]   ;;  %v1827_v36 = vld [vmem:[%s2392_s0 + $0x70] sm:$0xff]  }
   0xd   :  { %v1842_v35 = vld [vmem:[%s2392_s0 + $0xe8] sm:$0xff]   ;;  %v1843_v37 = vld [vmem:[%s2392_s0 + $0xf0] sm:$0xff]   ;;  %v1828_v38 = vld [vmem:[%s2392_s0 + $0x78] sm:$0xff]  }
   0xe   :  { %v1844_v39 = vld [vmem:[%s2392_s0 + $0xf8] sm:$0xff]   ;;  %v1998_v40 = vld [vmem:[%s2393_s2] ss:$0 sm:$0xff] }
   0xf   :  { %1715 = vmatpush3.bf16.msra.mxu0 %v1808_v3  ;;  %1799 = vmatpush3.bf16.msra.mxu1 %v1808_v3 }
  0x10   :  { %1716 = vmatprep.subr.bf16.mxu0 %v1809_v5  ;;  %1792 = vmatprep.subr.bf16.mxu1 %v1809_v5 }
  0x13   :  { %1717 = vmatpush3.bf16.msra.mxu0 %v1809_v5  ;;  %1800 = vmatpush3.bf16.msra.mxu1 %v1809_v5 }
  0x14   :  { %1718 = vmatprep.subr.bf16.mxu0 %v1810_v6  ;;  %1793 = vmatprep.subr.bf16.mxu1 %v1810_v6 }
  0x17   :  { %1719 = vmatpush3.bf16.msra.mxu0 %v1810_v6  ;;  %1801 = vmatpush3.bf16.msra.mxu1 %v1810_v6 }
  0x18   :  { %1720 = vmatprep.subr.bf16.mxu0 %v1811_v7  ;;  %1794 = vmatprep.subr.bf16.mxu1 %v1811_v7 }
  0x1b   :  { %1721 = vmatpush3.bf16.msra.mxu0 %v1811_v7  ;;  %1802 = vmatpush3.bf16.msra.mxu1 %v1811_v7 }
  0x1c   :  { %1722 = vmatprep.subr.bf16.mxu0 %v1812_v8  ;;  %1795 = vmatprep.subr.bf16.mxu1 %v1812_v8 }
  0x1f   :  { %1723 = vmatpush3.bf16.msra.mxu0 %v1812_v8  ;;  %1803 = vmatpush3.bf16.msra.mxu1 %v1812_v8 }
  0x22   :  { %1725 = vmatmul.mubr.bf16.vlgmr.msra.gmra.mrb[0].mxu0 %v1814_v10  ;;  %1757 = vmatmul.mubr.bf16.vlgmr.msra.gmra.mrb[0].mxu1 %v1830_v12 }
  0x23   :  { %1728 = vmatprep.mubr.bf16.mxu0 %v1815_v11  ;;  %1760 = vmatprep.mubr.bf16.mxu1 %v1831_v13 }
  0x2a   :  { %1729 = vmatmul.mubr.bf16.gmra.mrb[4].mxu0 %v1816_v14  ;;  %1761 = vmatmul.mubr.bf16.gmra.mrb[4].mxu1 %v1832_v16 }
  0x2b   :  { %1732 = vmatprep.mubr.bf16.mxu0 %v1817_v15  ;;  %1764 = vmatprep.mubr.bf16.mxu1 %v1833_v17 }
  0x32   :  { %1733 = vmatmul.mubr.bf16.gmra.mrb[8].mxu0 %v1818_v18  ;;  %1765 = vmatmul.mubr.bf16.gmra.mrb[8].mxu1 %v1834_v19 }
  0x33   :  { %1736 = vmatprep.mubr.bf16.mxu0 %v1819_v20  ;;  %1768 = vmatprep.mubr.bf16.mxu1 %v1835_v21 }
  0x3a   :  { %1737 = vmatmul.mubr.bf16.gmra.mrb[12].mxu0 %v1820_v22  ;;  %1769 = vmatmul.mubr.bf16.gmra.mrb[12].mxu1 %v1836_v23 }
  0x3b   :  { %1740 = vmatprep.mubr.bf16.mxu0 %v1821_v24  ;;  %1772 = vmatprep.mubr.bf16.mxu1 %v1837_v25 }
  0x42   :  { %1741 = vmatmul.mubr.bf16.gmra.mrb[16].mxu0 %v1822_v26  ;;  %1773 = vmatmul.mubr.bf16.gmra.mrb[16].mxu1 %v1838_v27 }
  0x43   :  { %1744 = vmatprep.mubr.bf16.mxu0 %v1823_v28  ;;  %1776 = vmatprep.mubr.bf16.mxu1 %v1839_v29 }
  0x4a   :  { %1745 = vmatmul.mubr.bf16.gmra.mrb[20].mxu0 %v1824_v30  ;;  %1777 = vmatmul.mubr.bf16.gmra.mrb[20].mxu1 %v1840_v31 }
  0x4b   :  { %1748 = vmatprep.mubr.bf16.mxu0 %v1825_v32  ;;  %1780 = vmatprep.mubr.bf16.mxu1 %v1841_v33 }
  0x52   :  { %1749 = vmatmul.mubr.bf16.gmra.mrb[24].mxu0 %v1826_v34  ;;  %1781 = vmatmul.mubr.bf16.gmra.mrb[24].mxu1 %v1842_v35 }
  0x53   :  { %1752 = vmatprep.mubr.bf16.mxu0 %v1827_v36  ;;  %1784 = vmatprep.mubr.bf16.mxu1 %v1843_v37 }
  0x5a   :  { %1753 = vmatmul.mubr.bf16.gmra.mrb[28].mxu0 %v1828_v38  ;;  %1785 = vmatmul.mubr.bf16.gmra.mrb[28].mxu1 %v1844_v39 }
  0xf5   :  { %v1726_v41 = vpop.f32.mrb[0].mxu0  ;;  %v1758_v42 = vpop.f32.mrb[0].mxu1 }
  0xf6   :  { %v424_v43 = vadd.f32 %v1726_v41, %v1998_v40  ;;  %v415_v44 = vpop.f32.mrb[1].mxu0  ;;  %v552_v45 = vadd.f32 %v1758_v42, %v1998_v40  ;;  %v543_v46 = vpop.f32.mrb[1].mxu1 }
  0xf7   :  { %v416_v47 = vadd.f32 %v1998_v40, %v415_v44  ;;  %v1727_v48 = vpop.f32.mrb[2].mxu0  ;;  %v544_v49 = vadd.f32 %v1998_v40, %v543_v46  ;;  %v1759_v50 = vpop.f32.mrb[2].mxu1 }
  0xf8   :  { %v427_v51 = vadd.f32 %v1727_v48, %v1998_v40  ;;  %v418_v52 = vpop.f32.mrb[3].mxu0  ;;  %v2005_v53 = vmax.f32 %v552_v45, 0.0  ;;  %v555_v54 = vadd.f32 %v1759_v50, %v1998_v40  ;;  %v546_v55 = vpop.f32.mrb[3].mxu1  ;;  %v672_v60 = vmax.f32 %v424_v43, 0.0 }
  0xf9   :  { %v670_v56 = vmax.f32 %v416_v47, 0.0  ;;  %v419_v57 = vadd.f32 %v1998_v40, %v418_v52  ;;  %v2009_v58 = vmax.f32 %v544_v49, 0.0  ;;  %v547_v59 = vadd.f32 %v1998_v40, %v546_v55 }
  0xfa   :  { %v673_v61 = vmax.f32 %v427_v51, 0.0  ;;  %v2012_v62 = vmax.f32 %v555_v54, 0.0  ;;  %v1135_v14 = vmul.f32 %v672_v60, %v672_v60 }
  0xfb   :  { %v671_v63 = vmax.f32 %v419_v57, 0.0  ;;  %v2014_v0 = vmax.f32 %v547_v59, 0.0  ;;  %v1133_v1 = vmul.f32 %v670_v56, %v670_v56 }
  0xfc   :  { %v1485_v2 = vpack.c.bf16 %v673_v61, %v672_v60  ;;  %v1565_v3 = vpack.c.bf16 %v2012_v62, %v2005_v53  ;;  %v1136_v20 = vmul.f32 %v673_v61, %v673_v61 }
  0xfd   :  { %v1480_v4 = vpack.c.bf16 %v671_v63, %v670_v56  ;;  %v1061_v5 = vadd.f32 %v671_v63, %v670_v56  ;;  %v1134_v6 = vmul.f32 %v671_v63, %v671_v63  ;;  %v1730_v7 = vpop.f32.mrb[4].mxu0  ;;  %v1560_v8 = vpack.c.bf16 %v2014_v0, %v2009_v58  ;;  %v1762_v9 = vpop.f32.mrb[4].mxu1 }
  0xfe   :  { %1637 = vst [vmem:[%s2394_s3 + $0x8] sm:$0xff] %v1485_v2   ;;  %v440_v10 = vadd.f32 %v1730_v7, %v1998_v40  ;;  %v431_v11 = vpop.f32.mrb[5].mxu0  ;;  %1653 = vst [vmem:[%s2394_s3 + $0x88] sm:$0xff] %v1565_v3   ;;  %v568_v12 = vadd.f32 %v1762_v9, %v1998_v40  ;;  %v559_v13 = vpop.f32.mrb[5].mxu1 }
  0xff   :  { %1481 = vst [vmem:[%s2394_s3] sm:$0xff] %v1480_v4   ;;  %v1062_v15 = vadd.f32 %v1061_v5, %v672_v60  ;;  %v1197_v16 = vadd.f32 %v1134_v6, %v1133_v1  ;;  %v432_v17 = vadd.f32 %v1998_v40, %v431_v11  ;;  %v1731_v18 = vpop.f32.mrb[6].mxu0  ;;  %1652 = vst [vmem:[%s2394_s3 + $0x80] sm:$0xff] %v1560_v8   ;;  %v1763_v19 = vpop.f32.mrb[6].mxu1 }
 0x100   :  { %v443_v21 = vadd.f32 %v1731_v18, %v1998_v40  ;;  %v434_v22 = vpop.f32.mrb[7].mxu0  ;;  %v571_v23 = vadd.f32 %v1763_v19, %v1998_v40  ;;  %v562_v24 = vpop.f32.mrb[7].mxu1  ;;  %v676_v29 = vmax.f32 %v440_v10, 0.0  ;;  %v2038_v31 = vmax.f32 %v568_v12, 0.0 }
 0x101   :  { %v1198_v25 = vadd.f32 %v1197_v16, %v1135_v14  ;;  %v674_v26 = vmax.f32 %v432_v17, 0.0  ;;  %v1063_v27 = vadd.f32 %v1062_v15, %v673_v61  ;;  %v435_v28 = vadd.f32 %v1998_v40, %v434_v22 }
 0x102   :  { %v677_v30 = vmax.f32 %v443_v21, 0.0  ;;  %v560_v32 = vadd.f32 %v1998_v40, %v559_v13  ;;  %v2041_v38 = vmax.f32 %v571_v23, 0.0  ;;  %v563_v50 = vadd.f32 %v1998_v40, %v562_v24 }
 0x103   :  { %v1064_v33 = vadd.f32 %v1063_v27, %v674_v26  ;;  %v1137_v34 = vmul.f32 %v674_v26, %v674_v26  ;;  %v1199_v35 = vadd.f32 %v1198_v25, %v1136_v20  ;;  %v675_v36 = vmax.f32 %v435_v28, 0.0 }
 0x104   :  { %v1495_v37 = vpack.c.bf16 %v677_v30, %v676_v29  ;;  %v2047_v48 = vmax.f32 %v560_v32, 0.0  ;;  %v1575_v49 = vpack.c.bf16 %v2041_v38, %v2038_v31  ;;  %v1139_v52 = vmul.f32 %v676_v29, %v676_v29 }
 0x105   :  { %v1200_v39 = vadd.f32 %v1199_v35, %v1137_v34  ;;  %v1490_v41 = vpack.c.bf16 %v675_v36, %v674_v26  ;;  %v1065_v42 = vadd.f32 %v1064_v33, %v675_v36  ;;  %v1138_v43 = vmul.f32 %v675_v36, %v675_v36  ;;  %v1734_v44 = vpop.f32.mrb[8].mxu0  ;;  %v1766_v45 = vpop.f32.mrb[8].mxu1 }
 0x106   :  { %1639 = vst [vmem:[%s2394_s3 + $0x18] sm:$0xff] %v1495_v37   ;;  %v456_v46 = vadd.f32 %v1734_v44, %v1998_v40  ;;  %v447_v47 = vpop.f32.mrb[9].mxu0  ;;  %v575_v51 = vpop.f32.mrb[9].mxu1  ;;  %v1140_v60 = vmul.f32 %v677_v30, %v677_v30  ;;  %1655 = vst [vmem:[%s2394_s3 + $0x98] sm:$0xff] %v1575_v49   ;;  %v2060_v1 = vmax.f32 %v563_v50, 0.0  ;;  %v584_v10 = vadd.f32 %v1766_v45, %v1998_v40 }
 0x107   :  { %1638 = vst [vmem:[%s2394_s3 + $0x10] sm:$0xff] %v1490_v41   ;;  %v1066_v54 = vadd.f32 %v1065_v42, %v676_v29  ;;  %v1201_v55 = vadd.f32 %v1200_v39, %v1138_v43  ;;  %v448_v56 = vadd.f32 %v1998_v40, %v447_v47  ;;  %v1735_v57 = vpop.f32.mrb[10].mxu0  ;;  %v1767_v59 = vpop.f32.mrb[10].mxu1  ;;  %v576_v25 = vadd.f32 %v1998_v40, %v575_v51 }
 0x108   :  { %v459_v61 = vadd.f32 %v1735_v57, %v1998_v40  ;;  %v450_v63 = vpop.f32.mrb[11].mxu0  ;;  %v578_v2 = vpop.f32.mrb[11].mxu1  ;;  %v680_v7 = vmax.f32 %v456_v46, 0.0  ;;  %v1570_v9 = vpack.c.bf16 %v2060_v1, %v2047_v48  ;;  %v2073_v24 = vmax.f32 %v584_v10, 0.0 }
 0x109   :  { %v1202_v3 = vadd.f32 %v1201_v55, %v1139_v52  ;;  %v678_v4 = vmax.f32 %v448_v56, 0.0  ;;  %v1067_v5 = vadd.f32 %v1066_v54, %v677_v30  ;;  %v451_v6 = vadd.f32 %v1998_v40, %v450_v63 }
 0x10a   :  { %v681_v8 = vmax.f32 %v459_v61, 0.0  ;;  %1654 = vst [vmem:[%s2394_s3 + $0x90] sm:$0xff] %v1570_v9   ;;  %v587_v26 = vadd.f32 %v1767_v59, %v1998_v40  ;;  %v1143_v28 = vmul.f32 %v680_v7, %v680_v7  ;;  %v579_v41 = vadd.f32 %v1998_v40, %v578_v2 }
 0x10b   :  { %v1068_v11 = vadd.f32 %v1067_v5, %v678_v4  ;;  %v1141_v12 = vmul.f32 %v678_v4, %v678_v4  ;;  %v1203_v13 = vadd.f32 %v1202_v3, %v1140_v60  ;;  %v679_v14 = vmax.f32 %v451_v6, 0.0 }
 0x10c   :  { %v1505_v15 = vpack.c.bf16 %v681_v8, %v680_v7  ;;  %v1144_v35 = vmul.f32 %v681_v8, %v681_v8  ;;  %v2082_v39 = vmax.f32 %v587_v26, 0.0  ;;  %v2086_v50 = vmax.f32 %v576_v25, 0.0 }
 0x10d   :  { %v1204_v16 = vadd.f32 %v1203_v13, %v1141_v12  ;;  %v1500_v17 = vpack.c.bf16 %v679_v14, %v678_v4  ;;  %v1069_v18 = vadd.f32 %v1068_v11, %v679_v14  ;;  %v1142_v19 = vmul.f32 %v679_v14, %v679_v14  ;;  %v1738_v20 = vpop.f32.mrb[12].mxu0  ;;  %v1770_v21 = vpop.f32.mrb[12].mxu1 }
 0x10e   :  { %1641 = vst [vmem:[%s2394_s3 + $0x28] sm:$0xff] %v1505_v15   ;;  %v472_v22 = vadd.f32 %v1738_v20, %v1998_v40  ;;  %v463_v23 = vpop.f32.mrb[13].mxu0  ;;  %v591_v27 = vpop.f32.mrb[13].mxu1  ;;  %v1585_v51 = vpack.c.bf16 %v2082_v39, %v2073_v24  ;;  %v2093_v59 = vmax.f32 %v579_v41, 0.0  ;;  %v600_v60 = vadd.f32 %v1770_v21, %v1998_v40 }
 0x10f   :  { %1640 = vst [vmem:[%s2394_s3 + $0x20] sm:$0xff] %v1500_v17   ;;  %v1070_v29 = vadd.f32 %v1069_v18, %v680_v7  ;;  %v1205_v30 = vadd.f32 %v1204_v16, %v1142_v19  ;;  %v464_v32 = vadd.f32 %v1998_v40, %v463_v23  ;;  %v1739_v33 = vpop.f32.mrb[14].mxu0  ;;  %v1771_v34 = vpop.f32.mrb[14].mxu1  ;;  %v592_v20 = vadd.f32 %v1998_v40, %v591_v27 }
 0x110   :  { %v475_v36 = vadd.f32 %v1739_v33, %v1998_v40  ;;  %v466_v37 = vpop.f32.mrb[15].mxu0  ;;  %v594_v42 = vpop.f32.mrb[15].mxu1  ;;  %v684_v47 = vmax.f32 %v472_v22, 0.0  ;;  %1657 = vst [vmem:[%s2394_s3 + $0xa8] sm:$0xff] %v1585_v51   ;;  %v1580_v9 = vpack.c.bf16 %v2093_v59, %v2086_v50  ;;  %v2114_v19 = vmax.f32 %v600_v60, 0.0 }
 0x111   :  { %v1206_v43 = vadd.f32 %v1205_v30, %v1143_v28  ;;  %v682_v44 = vmax.f32 %v464_v32, 0.0  ;;  %v1071_v45 = vadd.f32 %v1070_v29, %v681_v8  ;;  %v467_v46 = vadd.f32 %v1998_v40, %v466_v37 }
 0x112   :  { %v685_v49 = vmax.f32 %v475_v36, 0.0  ;;  %v1147_v6 = vmul.f32 %v684_v47, %v684_v47  ;;  %1656 = vst [vmem:[%s2394_s3 + $0xa0] sm:$0xff] %v1580_v9   ;;  %v603_v21 = vadd.f32 %v1771_v34, %v1998_v40  ;;  %v595_v33 = vadd.f32 %v1998_v40, %v594_v42 }
 0x113   :  { %v1072_v52 = vadd.f32 %v1071_v45, %v682_v44  ;;  %v1145_v54 = vmul.f32 %v682_v44, %v682_v44  ;;  %v1207_v55 = vadd.f32 %v1206_v43, %v1144_v35  ;;  %v683_v56 = vmax.f32 %v467_v46, 0.0 }
 0x114   :  { %v1515_v57 = vpack.c.bf16 %v685_v49, %v684_v47  ;;  %v1148_v11 = vmul.f32 %v685_v49, %v685_v49  ;;  %v2121_v32 = vmax.f32 %v603_v21, 0.0  ;;  %v2124_v43 = vmax.f32 %v592_v20, 0.0 }
 0x115   :  { %v1208_v61 = vadd.f32 %v1207_v55, %v1145_v54  ;;  %v1510_v63 = vpack.c.bf16 %v683_v56, %v682_v44  ;;  %v1073_v2 = vadd.f32 %v1072_v52, %v683_v56  ;;  %v1146_v3 = vmul.f32 %v683_v56, %v683_v56  ;;  %v1742_v4 = vpop.f32.mrb[16].mxu0  ;;  %v2096_v5 = vpop.f32.mrb[16].mxu1 }
 0x116   :  { %1643 = vst [vmem:[%s2394_s3 + $0x38] sm:$0xff] %v1515_v57   ;;  %v488_v7 = vadd.f32 %v1742_v4, %v1998_v40  ;;  %v479_v8 = vpop.f32.mrb[17].mxu0  ;;  %v607_v10 = vpop.f32.mrb[17].mxu1  ;;  %v1595_v34 = vpack.c.bf16 %v2121_v32, %v2114_v19  ;;  %v2137_v54 = vmax.f32 %v595_v33, 0.0 }
 0x117   :  { %1642 = vst [vmem:[%s2394_s3 + $0x30] sm:$0xff] %v1510_v63   ;;  %v1074_v12 = vadd.f32 %v1073_v2, %v684_v47  ;;  %v1209_v13 = vadd.f32 %v1208_v61, %v1146_v3  ;;  %v480_v14 = vadd.f32 %v1998_v40, %v479_v8  ;;  %v1743_v15 = vpop.f32.mrb[18].mxu0  ;;  %v2108_v16 = vpop.f32.mrb[18].mxu1 }
 0x118   :  { %v491_v17 = vadd.f32 %v1743_v15, %v1998_v40  ;;  %v482_v18 = vpop.f32.mrb[19].mxu0  ;;  %v2118_v22 = vpop.f32.mrb[19].mxu1  ;;  %v688_v29 = vmax.f32 %v488_v7, 0.0  ;;  %1659 = vst [vmem:[%s2394_s3 + $0xb8] sm:$0xff] %v1595_v34   ;;  %v1590_v8 = vpack.c.bf16 %v2137_v54, %v2124_v43 }
 0x119   :  { %v1210_v23 = vadd.f32 %v1209_v13, %v1147_v6  ;;  %v686_v25 = vmax.f32 %v480_v14, 0.0  ;;  %v1075_v26 = vadd.f32 %v1074_v12, %v685_v49  ;;  %v483_v28 = vadd.f32 %v1998_v40, %v482_v18 }
 0x11a   :  { %v689_v30 = vmax.f32 %v491_v17, 0.0  ;;  %v1151_v56 = vmul.f32 %v688_v29, %v688_v29  ;;  %1658 = vst [vmem:[%s2394_s3 + $0xb0] sm:$0xff] %v1590_v8   ;;  %v616_v17 = vadd.f32 %v2096_v5, %v1998_v40  ;;  %v608_v18 = vadd.f32 %v1998_v40, %v607_v10 }
 0x11b   :  { %v1076_v35 = vadd.f32 %v1075_v26, %v686_v25  ;;  %v1149_v36 = vmul.f32 %v686_v25, %v686_v25  ;;  %v1211_v37 = vadd.f32 %v1210_v23, %v1148_v11  ;;  %v687_v41 = vmax.f32 %v483_v28, 0.0 }
 0x11c   :  { %v1525_v27 = vpack.c.bf16 %v689_v30, %v688_v29  ;;  %v1152_v3 = vmul.f32 %v689_v30, %v689_v30  ;;  %v611_v34 = vadd.f32 %v1998_v40, %v2118_v22 }
 0x11d   :  { %v1212_v44 = vadd.f32 %v1211_v37, %v1149_v36  ;;  %v1520_v45 = vpack.c.bf16 %v687_v41, %v686_v25  ;;  %v1077_v46 = vadd.f32 %v1076_v35, %v687_v41  ;;  %v1150_v47 = vmul.f32 %v687_v41, %v687_v41  ;;  %v1746_v49 = vpop.f32.mrb[20].mxu0  ;;  %v2128_v51 = vpop.f32.mrb[20].mxu1 }
 0x11e   :  { %1645 = vst [vmem:[%s2394_s3 + $0x48] sm:$0xff] %v1525_v27   ;;  %v504_v42 = vadd.f32 %v1746_v49, %v1998_v40  ;;  %v495_v52 = vpop.f32.mrb[21].mxu0  ;;  %v2139_v55 = vpop.f32.mrb[21].mxu1  ;;  %v2165_v41 = vmax.f32 %v616_v17, 0.0  ;;  %v619_v27 = vadd.f32 %v2108_v16, %v1998_v40 }
 0x11f   :  { %1644 = vst [vmem:[%s2394_s3 + $0x40] sm:$0xff] %v1520_v45   ;;  %v1078_v57 = vadd.f32 %v1077_v46, %v688_v29  ;;  %v1213_v60 = vadd.f32 %v1212_v44, %v1150_v47  ;;  %v496_v61 = vadd.f32 %v1998_v40, %v495_v52  ;;  %v1747_v63 = vpop.f32.mrb[22].mxu0  ;;  %v2145_v2 = vpop.f32.mrb[22].mxu1 }
 0x120   :  { %v692_v4 = vmax.f32 %v504_v42, 0.0  ;;  %v507_v6 = vadd.f32 %v1747_v63, %v1998_v40  ;;  %v498_v7 = vpop.f32.mrb[23].mxu0  ;;  %v2150_v9 = vpop.f32.mrb[23].mxu1  ;;  %v2177_v42 = vmax.f32 %v608_v18, 0.0  ;;  %v2182_v22 = vmax.f32 %v619_v27, 0.0 }
 0x121   :  { %v1214_v11 = vadd.f32 %v1213_v60, %v1151_v56  ;;  %v690_v12 = vmax.f32 %v496_v61, 0.0  ;;  %v1079_v13 = vadd.f32 %v1078_v57, %v689_v30  ;;  %v499_v14 = vadd.f32 %v1998_v40, %v498_v7 }
 0x122   :  { %v693_v15 = vmax.f32 %v507_v6, 0.0  ;;  %v1155_v26 = vmul.f32 %v692_v4, %v692_v4  ;;  %v2184_v60 = vmax.f32 %v611_v34, 0.0 }
 0x123   :  { %v1080_v20 = vadd.f32 %v1079_v13, %v690_v12  ;;  %v1153_v21 = vmul.f32 %v690_v12, %v690_v12  ;;  %v1215_v23 = vadd.f32 %v1214_v11, %v1152_v3  ;;  %v691_v25 = vmax.f32 %v499_v14, 0.0 }
 0x124   :  { %v1535_v28 = vpack.c.bf16 %v693_v15, %v692_v4  ;;  %v1156_v56 = vmul.f32 %v693_v15, %v693_v15  ;;  %v1605_v11 = vpack.c.bf16 %v2182_v22, %v2165_v41 }
 0x125   :  { %v1216_v29 = vadd.f32 %v1215_v23, %v1153_v21  ;;  %v1530_v30 = vpack.c.bf16 %v691_v25, %v690_v12  ;;  %v1081_v33 = vadd.f32 %v1080_v20, %v691_v25  ;;  %v1154_v35 = vmul.f32 %v691_v25, %v691_v25  ;;  %v1750_v36 = vpop.f32.mrb[24].mxu0  ;;  %v2159_v37 = vpop.f32.mrb[24].mxu1 }
 0x126   :  { %1647 = vst [vmem:[%s2394_s3 + $0x58] sm:$0xff] %v1535_v28   ;;  %v520_v5 = vadd.f32 %v1750_v36, %v1998_v40  ;;  %v511_v10 = vpop.f32.mrb[25].mxu0  ;;  %v2171_v44 = vpop.f32.mrb[25].mxu1  ;;  %1661 = vst [vmem:[%s2394_s3 + $0xc8] sm:$0xff] %v1605_v11   ;;  %v1600_v20 = vpack.c.bf16 %v2184_v60, %v2177_v42  ;;  %v624_v21 = vadd.f32 %v1998_v40, %v2139_v55 }
 0x127   :  { %1646 = vst [vmem:[%s2394_s3 + $0x50] sm:$0xff] %v1530_v30   ;;  %v1082_v45 = vadd.f32 %v1081_v33, %v692_v4  ;;  %v1217_v46 = vadd.f32 %v1216_v29, %v1154_v35  ;;  %v512_v47 = vadd.f32 %v1998_v40, %v511_v10  ;;  %v1751_v49 = vpop.f32.mrb[26].mxu0  ;;  %v2179_v52 = vpop.f32.mrb[26].mxu1 }
 0x128   :  { %v523_v16 = vadd.f32 %v1751_v49, %v1998_v40  ;;  %v514_v57 = vpop.f32.mrb[27].mxu0  ;;  %v2186_v61 = vpop.f32.mrb[27].mxu1  ;;  %v696_v7 = vmax.f32 %v520_v5, 0.0  ;;  %1660 = vst [vmem:[%s2394_s3 + $0xc0] sm:$0xff] %v1600_v20  }
 0x129   :  { %v1218_v63 = vadd.f32 %v1217_v46, %v1155_v26  ;;  %v694_v3 = vmax.f32 %v512_v47, 0.0  ;;  %v1083_v4 = vadd.f32 %v1082_v45, %v693_v15  ;;  %v515_v6 = vadd.f32 %v1998_v40, %v514_v57 }
 0x12a   :  { %v697_v8 = vmax.f32 %v523_v16, 0.0  ;;  %v632_v15 = vadd.f32 %v2128_v51, %v1998_v40  ;;  %v1159_v33 = vmul.f32 %v696_v7, %v696_v7  ;;  %v635_v51 = vadd.f32 %v2145_v2, %v1998_v40 }
 0x12b   :  { %v1084_v12 = vadd.f32 %v1083_v4, %v694_v3  ;;  %v1157_v13 = vmul.f32 %v694_v3, %v694_v3  ;;  %v1219_v14 = vadd.f32 %v1218_v63, %v1156_v56  ;;  %v695_v17 = vmax.f32 %v515_v6, 0.0 }
 0x12c   :  { %v1545_v18 = vpack.c.bf16 %v697_v8, %v696_v7  ;;  %v627_v45 = vadd.f32 %v1998_v40, %v2150_v9  ;;  %v1160_v47 = vmul.f32 %v697_v8, %v697_v8  ;;  %v2216_v16 = vmax.f32 %v632_v15, 0.0 }
 0x12d   :  { %v1220_v23 = vadd.f32 %v1219_v14, %v1157_v13  ;;  %v1540_v25 = vpack.c.bf16 %v695_v17, %v694_v3  ;;  %v1085_v26 = vadd.f32 %v1084_v12, %v695_v17  ;;  %v1158_v28 = vmul.f32 %v695_v17, %v695_v17  ;;  %v1754_v29 = vpop.f32.mrb[28].mxu0  ;;  %v1786_v30 = vpop.f32.mrb[28].mxu1 }
 0x12e   :  { %1649 = vst [vmem:[%s2394_s3 + $0x68] sm:$0xff] %v1545_v18   ;;  %v536_v35 = vadd.f32 %v1754_v29, %v1998_v40  ;;  %v527_v36 = vpop.f32.mrb[29].mxu0  ;;  %v655_v55 = vpop.f32.mrb[29].mxu1  ;;  %v2218_v2 = vmax.f32 %v624_v21, 0.0  ;;  %v2221_v12 = vmax.f32 %v635_v51, 0.0  ;;  %v2223_v9 = vmax.f32 %v627_v45, 0.0 }
 0x12f   :  { %1648 = vst [vmem:[%s2394_s3 + $0x60] sm:$0xff] %v1540_v25   ;;  %v1086_v5 = vadd.f32 %v1085_v26, %v696_v7  ;;  %v1221_v10 = vadd.f32 %v1220_v23, %v1158_v28  ;;  %v528_v27 = vadd.f32 %v1998_v40, %v527_v36  ;;  %v1755_v34 = vpop.f32.mrb[30].mxu0  ;;  %v1787_v46 = vpop.f32.mrb[30].mxu1  ;;  %v1165_v15 = vmul.f32 %v2009_v58, %v2009_v58 }
 0x130   :  { %v539_v49 = vadd.f32 %v1755_v34, %v1998_v40  ;;  %v530_v56 = vpop.f32.mrb[31].mxu0  ;;  %v658_v57 = vpop.f32.mrb[31].mxu1  ;;  %v700_v7 = vmax.f32 %v536_v35, 0.0  ;;  %v1615_v21 = vpack.c.bf16 %v2221_v12, %v2216_v16  ;;  %v1610_v29 = vpack.c.bf16 %v2223_v9, %v2218_v2 }
 0x131   :  { %v1222_v63 = vadd.f32 %v1221_v10, %v1159_v33  ;;  %v698_v3 = vmax.f32 %v528_v27, 0.0  ;;  %v1087_v4 = vadd.f32 %v1086_v5, %v697_v8  ;;  %v531_v6 = vadd.f32 %v1998_v40, %v530_v56 }
 0x132   :  { %v701_v11 = vmax.f32 %v539_v49, 0.0  ;;  %v1163_v28 = vmul.f32 %v700_v7, %v700_v7  ;;  %1663 = vst [vmem:[%s2394_s3 + $0xd8] sm:$0xff] %v1615_v21   ;;  %v648_v33 = vadd.f32 %v2159_v37, %v1998_v40  ;;  %v640_v35 = vadd.f32 %v1998_v40, %v2171_v44  ;;  %1662 = vst [vmem:[%s2394_s3 + $0xd0] sm:$0xff] %v1610_v29  }
 0x133   :  { %v1088_v13 = vadd.f32 %v1087_v4, %v698_v3  ;;  %v1161_v14 = vmul.f32 %v698_v3, %v698_v3  ;;  %v1223_v17 = vadd.f32 %v1222_v63, %v1160_v47  ;;  %v699_v18 = vmax.f32 %v531_v6, 0.0 }
 0x134   :  { %v1555_v20 = vpack.c.bf16 %v701_v11, %v700_v7  ;;  %v651_v5 = vadd.f32 %v2179_v52, %v1998_v40  ;;  %v643_v10 = vadd.f32 %v1998_v40, %v2186_v61  ;;  %v1164_v27 = vmul.f32 %v701_v11, %v701_v11 }
 0x135   :  { %v1224_v8 = vadd.f32 %v1223_v17, %v1161_v14  ;;  %v1550_v23 = vpack.c.bf16 %v699_v18, %v698_v3  ;;  %v1089_v25 = vadd.f32 %v1088_v13, %v699_v18  ;;  %v1162_v26 = vmul.f32 %v699_v18, %v699_v18 }
 0x136   :  { %1651 = vst [vmem:[%s2394_s3 + $0x78] sm:$0xff] %v1555_v20   ;;  %v2251_v37 = vmax.f32 %v648_v33, 0.0  ;;  %v2253_v44 = vmax.f32 %v640_v35, 0.0  ;;  %v664_v34 = vadd.f32 %v1786_v30, %v1998_v40  ;;  %v2256_v49 = vmax.f32 %v651_v5, 0.0 }
 0x137   :  { %1650 = vst [vmem:[%s2394_s3 + $0x70] sm:$0xff] %v1550_v23   ;;  %v1090_v36 = vadd.f32 %v1089_v25, %v700_v7  ;;  %v1225_v51 = vadd.f32 %v1224_v8, %v1162_v26  ;;  %v2258_v56 = vmax.f32 %v643_v10, 0.0  ;;  %v656_v52 = vadd.f32 %v1998_v40, %v655_v55 }
 0x138   :  { %v1625_v3 = vpack.c.bf16 %v2256_v49, %v2251_v37  ;;  %v1166_v4 = vmul.f32 %v2014_v0, %v2014_v0  ;;  %v2268_v6 = vmax.f32 %v664_v34, 0.0  ;;  %v659_v55 = vadd.f32 %v1998_v40, %v658_v57 }
 0x139   :  { %v1226_v45 = vadd.f32 %v1225_v51, %v1163_v28  ;;  %v1091_v47 = vadd.f32 %v1090_v36, %v701_v11  ;;  %v1620_v30 = vpack.c.bf16 %v2258_v56, %v2253_v44  ;;  %v1167_v13 = vmul.f32 %v2005_v53, %v2005_v53 }
 0x13a   :  { %1665 = vst [vmem:[%s2394_s3 + $0xe8] sm:$0xff] %v1625_v3   ;;  %v2281_v14 = vmax.f32 %v656_v52, 0.0  ;;  %v2286_v20 = vmax.f32 %v659_v55, 0.0  ;;  %v1170_v26 = vmul.f32 %v2060_v1, %v2060_v1  ;;  %v1171_v28 = vmul.f32 %v2038_v31, %v2038_v31 }
 0x13b   :  { %v1092_v61 = vadd.f32 %v1091_v47, %v2009_v58  ;;  %v1227_v63 = vadd.f32 %v1226_v45, %v1164_v27  ;;  %v667_v58 = vadd.f32 %v1787_v46, %v1998_v40  ;;  %1664 = vst [vmem:[%s2394_s3 + $0xe0] sm:$0xff] %v1620_v30   ;;  %v1168_v46 = vmul.f32 %v2012_v62, %v2012_v62 }
 0x13c   :  { %v1172_v33 = vmul.f32 %v2041_v38, %v2041_v38  ;;  %v1173_v51 = vmul.f32 %v2086_v50, %v2086_v50  ;;  %v1174_v34 = vmul.f32 %v2093_v59, %v2093_v59  ;;  %v1178_v30 = vmul.f32 %v2137_v54, %v2137_v54 }
 0x13d   :  { %v1228_v7 = vadd.f32 %v1227_v63, %v1165_v15  ;;  %v1093_v11 = vadd.f32 %v1092_v61, %v2014_v0  ;;  %v2284_v18 = vmax.f32 %v667_v58, 0.0  ;;  %v1169_v15 = vmul.f32 %v2047_v48, %v2047_v48 }
 0x13f   :  { %v1094_v17 = vadd.f32 %v1093_v11, %v2005_v53  ;;  %v1229_v0 = vadd.f32 %v1228_v7, %v1166_v4  ;;  %v1635_v21 = vpack.c.bf16 %v2284_v18, %v2268_v6  ;;  %v1630_v53 = vpack.c.bf16 %v2286_v20, %v2281_v14 }
 0x141   :  { %v1230_v40 = vadd.f32 %v1229_v0, %v1167_v13  ;;  %v1095_v57 = vadd.f32 %v1094_v17, %v2012_v62  ;;  %1667 = vst [vmem:[%s2394_s3 + $0xf8] sm:$0xff] %v1635_v21   ;;  %1666 = vst [vmem:[%s2394_s3 + $0xf0] sm:$0xff] %v1630_v53  }
 0x143   :  { %v1096_v8 = vadd.f32 %v1095_v57, %v2047_v48  ;;  %v1231_v23 = vadd.f32 %v1230_v40, %v1168_v46  ;;  %v1182_v46 = vmul.f32 %v2184_v60, %v2184_v60 }
 0x145   :  { %v1232_v62 = vadd.f32 %v1231_v23, %v1169_v15  ;;  %v1097_v25 = vadd.f32 %v1096_v8, %v2060_v1 }
 0x147   :  { %v1098_v48 = vadd.f32 %v1097_v25, %v2038_v31  ;;  %v1233_v29 = vadd.f32 %v1232_v62, %v1170_v26  ;;  %v1175_v31 = vmul.f32 %v2073_v24, %v2073_v24  ;;  %v1186_v62 = vmul.f32 %v2223_v9, %v2223_v9 }
 0x149   :  { %v1234_v35 = vadd.f32 %v1233_v29, %v1171_v28  ;;  %v1099_v36 = vadd.f32 %v1098_v48, %v2041_v38  ;;  %v1176_v38 = vmul.f32 %v2082_v39, %v2082_v39 }
 0x14b   :  { %v1100_v5 = vadd.f32 %v1099_v36, %v2086_v50  ;;  %v1235_v10 = vadd.f32 %v1234_v35, %v1172_v33  ;;  %v1177_v50 = vmul.f32 %v2124_v43, %v2124_v43  ;;  %v1190_v36 = vmul.f32 %v2258_v56, %v2258_v56 }
 0x14d   :  { %v1236_v27 = vadd.f32 %v1235_v10, %v1173_v51  ;;  %v1101_v1 = vadd.f32 %v1100_v5, %v2093_v59 }
 0x14f   :  { %v1102_v45 = vadd.f32 %v1101_v1, %v2073_v24  ;;  %v1237_v47 = vadd.f32 %v1236_v27, %v1174_v34  ;;  %v1179_v24 = vmul.f32 %v2114_v19, %v2114_v19 }
 0x151   :  { %v1238_v52 = vadd.f32 %v1237_v47, %v1175_v31  ;;  %v1103_v61 = vadd.f32 %v1102_v45, %v2082_v39  ;;  %v1180_v39 = vmul.f32 %v2121_v32, %v2121_v32  ;;  %v1194_v45 = vmul.f32 %v2286_v20, %v2286_v20 }
 0x153   :  { %v1104_v63 = vadd.f32 %v1103_v61, %v2124_v43  ;;  %v1239_v3 = vadd.f32 %v1238_v52, %v1176_v38  ;;  %v1181_v43 = vmul.f32 %v2177_v42, %v2177_v42 }
 0x155   :  { %v1240_v4 = vadd.f32 %v1239_v3, %v1177_v50  ;;  %v1105_v59 = vadd.f32 %v1104_v63, %v2137_v54 }
 0x157   :  { %v1106_v7 = vadd.f32 %v1105_v59, %v2114_v19  ;;  %v1241_v11 = vadd.f32 %v1240_v4, %v1178_v30  ;;  %v1183_v19 = vmul.f32 %v2165_v41, %v2165_v41 }
 0x159   :  { %v1242_v58 = vadd.f32 %v1241_v11, %v1179_v24  ;;  %v1107_v55 = vadd.f32 %v1106_v7, %v2121_v32  ;;  %v1184_v32 = vmul.f32 %v2182_v22, %v2182_v22 }
 0x15b   :  { %v1108_v13 = vadd.f32 %v1107_v55, %v2177_v42  ;;  %v1243_v17 = vadd.f32 %v1242_v58, %v1180_v39  ;;  %v1185_v42 = vmul.f32 %v2218_v2, %v2218_v2 }
 0x15d   :  { %v1244_v0 = vadd.f32 %v1243_v17, %v1181_v43  ;;  %v1109_v54 = vadd.f32 %v1108_v13, %v2184_v60 }
 0x15f   :  { %v1110_v40 = vadd.f32 %v1109_v54, %v2165_v41  ;;  %v1245_v57 = vadd.f32 %v1244_v0, %v1182_v46  ;;  %v1187_v41 = vmul.f32 %v2216_v16, %v2216_v16 }
 0x161   :  { %v1246_v15 = vadd.f32 %v1245_v57, %v1183_v19  ;;  %v1111_v21 = vadd.f32 %v1110_v40, %v2182_v22  ;;  %v1188_v22 = vmul.f32 %v2221_v12, %v2221_v12 }
 0x163   :  { %v1112_v53 = vadd.f32 %v1111_v21, %v2218_v2  ;;  %v1247_v8 = vadd.f32 %v1246_v15, %v1184_v32  ;;  %v1189_v2 = vmul.f32 %v2253_v44, %v2253_v44 }
 0x165   :  { %v1248_v23 = vadd.f32 %v1247_v8, %v1185_v42  ;;  %v1113_v60 = vadd.f32 %v1112_v53, %v2223_v9 }
 0x167   :  { %v1114_v25 = vadd.f32 %v1113_v60, %v2216_v16  ;;  %v1249_v26 = vadd.f32 %v1248_v23, %v1186_v62  ;;  %v1191_v16 = vmul.f32 %v2251_v37, %v2251_v37 }
 0x169   :  { %v1250_v28 = vadd.f32 %v1249_v26, %v1187_v41  ;;  %v1115_v48 = vadd.f32 %v1114_v25, %v2221_v12  ;;  %v1192_v12 = vmul.f32 %v2256_v49, %v2256_v49 }
 0x16b   :  { %v1116_v29 = vadd.f32 %v1115_v48, %v2253_v44  ;;  %v1251_v33 = vadd.f32 %v1250_v28, %v1188_v22  ;;  %v1193_v44 = vmul.f32 %v2281_v14, %v2281_v14 }
 0x16d   :  { %v1252_v35 = vadd.f32 %v1251_v33, %v1189_v2  ;;  %v1117_v9 = vadd.f32 %v1116_v29, %v2258_v56 }
 0x16f   :  { %v1118_v51 = vadd.f32 %v1117_v9, %v2251_v37  ;;  %v1253_v5 = vadd.f32 %v1252_v35, %v1190_v36  ;;  %v1195_v37 = vmul.f32 %v2268_v6, %v2268_v6 }
 0x171   :  { %v1254_v10 = vadd.f32 %v1253_v5, %v1191_v16  ;;  %v1119_v27 = vadd.f32 %v1118_v51, %v2256_v49  ;;  %v1196_v49 = vmul.f32 %v2284_v18, %v2284_v18 }
 0x173   :  { %v1120_v1 = vadd.f32 %v1119_v27, %v2281_v14  ;;  %v1255_v34 = vadd.f32 %v1254_v10, %v1192_v12 }
 0x175   :  { %v1256_v31 = vadd.f32 %v1255_v34, %v1193_v44  ;;  %v1121_v56 = vadd.f32 %v1120_v1, %v2286_v20 }
 0x177   :  { %v1122_v47 = vadd.f32 %v1121_v56, %v2268_v6  ;;  %v1257_v38 = vadd.f32 %v1256_v31, %v1194_v45 }
 0x179   :  { %v1123_v52 = vadd.f32 %v1122_v47, %v2284_v18  ;;  %v1258_v61 = vadd.f32 %v1257_v38, %v1195_v37 }
 0x17b   :  { %v1124_v14 = vrot.slane %v1123_v52, 4  ;;  %v1259_v50 = vadd.f32 %v1258_v61, %v1196_v49 }
 0x17d   :  { %v1125_v63 = vadd.f32 %v1124_v14, %v1123_v52  ;;  %v1260_v3 = vrot.slane %v1259_v50, 4 }
 0x17f   :  { %v1126_v4 = vrot.slane %v1125_v63, 2  ;;  %v1261_v59 = vadd.f32 %v1260_v3, %v1259_v50 }
 0x181   :  { %v1127_v30 = vadd.f32 %v1126_v4, %v1125_v63  ;;  %v1262_v20 = vrot.slane %v1261_v59, 2 }
 0x183   :  { %v1128_v24 = vrot.slane %v1127_v30, 1  ;;  %v1263_v7 = vadd.f32 %v1262_v20, %v1261_v59 }
 0x185   :  { %v1129_v11 = vadd.f32 %v1128_v24, %v1127_v30  ;;  %v1264_v39 = vrot.slane %v1263_v7, 1 }
 0x187   :  { %v1265_v6 = vadd.f32 %v1264_v39, %v1263_v7  ;;  %1131 = vst [vmem:[%s2395_s4] sm:$0xff] %v1129_v11 }
 0x189   :  { %1267 = vst [vmem:[%s2396_s5] sm:$0xff] %v1265_v6 }

</bundles_post_ra>
